<compile_context>
chip_gen: v6e
topology: v6e:2x2x1
jax: 0.10.0
libtpu: 0.0.40
codegen_flags: <defaults>
</compile_context>

<pallas_src>
import functools
import math

import numpy as np
import jax
import jax.numpy as jnp
from jax.experimental import pallas as pl

# ----------------------------- hyper-parameters ------------------------------
NTOKENS = [101, 53]            # [code vocab, path vocab]
NCLS = 4
EMSIZES = [16, 16]
EMSIZE = sum(EMSIZES)          # 32
NHEAD = 2
NHID = 64
NLAYERS = 1
PATH_LEN = 20
WINDOW_SIZES = [2, 3, 4, 5]
KMAX = max(WINDOW_SIZES)
LN_EPS = 1e-5


# --------------------- kernel 1: fused path conv encoder ---------------------
def _path_conv_kernel(xf_ref, wconv_ref, bconv_ref, louts_ref,
                      wlin_ref, blin_ref, o_ref, *, n_rows, lpad, kmax):
    """All conv windows + ReLU + masked global max-pool + path_linear, fused.

    xf_ref    : (n_rows*lpad + kmax-1, Cin) zero-padded, batch-major flat rows
    wconv_ref : (kmax*Cin, W*Cout)  per-window weights, zero-padded to kmax taps
    bconv_ref : (1, W*Cout)
    louts_ref : (1, W*Cout) int32   valid conv output length per output column
    wlin_ref  : (W*Cout, E1), blin_ref : (1, E1)
    o_ref     : (n_rows, E1)
    """
    xf = xf_ref[...]
    m = n_rows * lpad
    # im2col as ONE matmul: slab[r, k*Cin + c] = xf[r + k, c]
    slab = jnp.concatenate([xf[k:k + m, :] for k in range(kmax)], axis=-1)
    y = jnp.dot(slab, wconv_ref[...], preferred_element_type=jnp.float32)
    y = jnp.maximum(y + bconv_ref[...], 0.0)                  # bias + ReLU
    c4 = y.shape[-1]
    # positions past each window's valid conv length -> 0 (neutral: ReLU >= 0)
    t_idx = jax.lax.broadcasted_iota(jnp.int32, (lpad, c4), 0)
    valid = t_idx < louts_ref[...]
    pooled = []
    for n in range(n_rows):                                   # static unroll (N=8)
        yn = jnp.where(valid, y[n * lpad:(n + 1) * lpad, :], 0.0)
        pooled.append(jnp.max(yn, axis=0, keepdims=True))     # (1, W*Cout)
    feats = jnp.concatenate(pooled, axis=0)                   # (n_rows, W*Cout)
    out = jnp.dot(feats, wlin_ref[...], preferred_element_type=jnp.float32)
    o_ref[...] = (out + blin_ref[...]).astype(o_ref.dtype)


def path_conv_encode_pallas(x, wconv, bconv, wlin, blin, *, window_sizes):
    """x: (N, L, Cin) NLC -> (N, E1).  One grid-less, VMEM-resident kernel."""
    n_rows, seq_l, cin = x.shape
    kmax = max(window_sizes)
    cout = bconv.shape[0] // len(window_sizes)
    louts = jnp.asarray(np.repeat(
        np.asarray([seq_l - h + 1 for h in window_sizes], np.int32), cout))
    lpad = seq_l + kmax - 1
    # flatten batch-major with per-sample zero tail so im2col shifts stay valid
    xf = jnp.pad(x, ((0, 0), (0, kmax - 1), (0, 0))).reshape(n_rows * lpad, cin)
    xf = jnp.pad(xf, ((0, kmax - 1), (0, 0)))
    e1 = wlin.shape[1]
    return pl.pallas_call(
        functools.partial(_path_conv_kernel, n_rows=n_rows, lpad=lpad, kmax=kmax),
        out_shape=jax.ShapeDtypeStruct((n_rows, e1), jnp.float32),
    )(xf, wconv, bconv.reshape(1, -1), louts.reshape(1, -1),
      wlin, blin.reshape(1, -1))


# ----------------- kernel 2: fused transformer encoder layer -----------------
def _encoder_layer_kernel(x_ref, wqkv_ref, bqkv_ref, wo_ref, bo_ref,
                          g1_ref, bln1_ref, wf1_ref, bf1_ref,
                          wf2_ref, bf2_ref, g2_ref, bln2_ref, *rest,
                          seq_len, batch, nhead, with_decoder):
    """One post-norm TransformerEncoderLayer (+ optional decoder + softmax).

    x_ref: (batch*seq_len, E); rows are batch-major (row = b*seq_len + s).
    """
    if with_decoder:
        wd_ref, bd_ref, out_ref, prob_ref = rest
    else:
        (out_ref,) = rest

    x = x_ref[...]
    e = x.shape[-1]
    dh = e // nhead
    scale = 1.0 / math.sqrt(dh)

    def layer_norm(v, g, b):
        mu = jnp.mean(v, axis=-1, keepdims=True)
        var = jnp.mean((v - mu) ** 2, axis=-1, keepdims=True)
        return (v - mu) * jax.lax.rsqrt(var + LN_EPS) * g + b

    # ---- self-attention ----
    qkv = jnp.dot(x, wqkv_ref[...], preferred_element_type=jnp.float32)
    qkv = qkv + bqkv_ref[...]                                 # (BS, 3E)
    o_rows = []
    for bi in range(batch):                                   # static unroll
        r0 = bi * seq_len
        heads = []
        for hi in range(nhead):
            c0 = hi * dh
            q = qkv[r0:r0 + seq_len, c0:c0 + dh] * scale
            k = qkv[r0:r0 + seq_len, e + c0:e + c0 + dh]
            v = qkv[r0:r0 + seq_len, 2 * e + c0:2 * e + c0 + dh]
            s = jax.lax.dot_general(q, k, (((1,), (1,)), ((), ())),
                                    preferred_element_type=jnp.float32)
            s = s - jnp.max(s, axis=-1, keepdims=True)
            p = jnp.exp(s)
            p = p / jnp.sum(p, axis=-1, keepdims=True)
            heads.append(jnp.dot(p, v, preferred_element_type=jnp.float32))
        o_rows.append(jnp.concatenate(heads, axis=-1))        # (S, E)
    o = jnp.concatenate(o_rows, axis=0)                       # (BS, E)
    attn = jnp.dot(o, wo_ref[...], preferred_element_type=jnp.float32) + bo_ref[...]

    # ---- residual + LN1, feed-forward (ReLU), residual + LN2 (post-norm) ----
    x1 = layer_norm(x + attn, g1_ref[...], bln1_ref[...])
    h = jnp.dot(x1, wf1_ref[...], preferred_element_type=jnp.float32) + bf1_ref[...]
    h = jnp.maximum(h, 0.0)
    h = jnp.dot(h, wf2_ref[...], preferred_element_type=jnp.float32) + bf2_ref[...]
    x2 = layer_norm(x1 + h, g2_ref[...], bln2_ref[...])
    out_ref[...] = x2.astype(out_ref.dtype)

    # ---- decoder linear + softmax epilogue (last layer only) ----
    if with_decoder:
        src0 = jnp.concatenate(
            [x2[bi * seq_len:bi * seq_len + 1, :] for bi in range(batch)], axis=0)
        logits = jnp.dot(src0, wd_ref[...], preferred_element_type=jnp.float32)
        logits = logits + bd_ref[...]
        logits = logits - jnp.max(logits, axis=-1, keepdims=True)
        ex = jnp.exp(logits)
        prob_ref[...] = (ex / jnp.sum(ex, axis=-1, keepdims=True)).astype(prob_ref.dtype)


def encoder_layer_pallas(x2d, lp, *, seq_len, batch, dec_w_t=None, dec_b=None):
    bs, e = x2d.shape
    with_decoder = dec_w_t is not None
    args = [x2d,
            lp['in_proj_w_t'], lp['in_proj_b'].reshape(1, -1),
            lp['out_proj_w_t'], lp['out_proj_b'].reshape(1, -1),
            lp['ln1_g'].reshape(1, -1), lp['ln1_b'].reshape(1, -1),
            lp['ff1_w_t'], lp['ff1_b'].reshape(1, -1),
            lp['ff2_w_t'], lp['ff2_b'].reshape(1, -1),
            lp['ln2_g'].reshape(1, -1), lp['ln2_b'].reshape(1, -1)]
    if with_decoder:
        args += [dec_w_t, dec_b.reshape(1, -1)]
        out_shape = (jax.ShapeDtypeStruct((bs, e), jnp.float32),
                     jax.ShapeDtypeStruct((batch, dec_w_t.shape[1]), jnp.float32))
    else:
        out_shape = jax.ShapeDtypeStruct((bs, e), jnp.float32)
    return pl.pallas_call(
        functools.partial(_encoder_layer_kernel, seq_len=seq_len, batch=batch,
                          nhead=NHEAD, with_decoder=with_decoder),
        out_shape=out_shape,
    )(*args)


# ------------------------------- JAX glue ------------------------------------
def positional_encoding(max_len, d):
    pos = np.arange(max_len, dtype=np.float32)[:, None]
    div = np.exp(np.arange(0, d, 2, dtype=np.float32) * (-math.log(10000.0) / d))
    pe = np.zeros((max_len, d), np.float32)
    pe[:, 0::2] = np.sin(pos * div)
    pe[:, 1::2] = np.cos(pos * div)
    return jnp.asarray(pe)                                    # (max_len, d)


def embed(tokens, emb, pe, emsize):
    """tokens: (..., S) int -> (..., S, emsize); seq on second-to-last axis."""
    x = emb[tokens] * math.sqrt(emsize)
    return x + pe[:tokens.shape[-1]]                          # dropout = identity (eval)


@jax.jit
def hit_conv1d_forward(params, code_inp, path_inp):
    """code_inp: (b, s) int32, path_inp: (b, s, path_len) int32 -> (b, ncls)."""
    b, s, p_len = path_inp.shape
    E0, E1 = EMSIZES

    # code branch (kept batch-major; row = b*s + s_idx, equivalent to torch (s,b,E))
    code_encode = embed(code_inp, params['emb0'], params['pe'], E0).reshape(b * s, E0)

    # path branch: 'b s p -> (b s) p', embed, fused conv/pool/linear (NLC layout)
    path_flat = path_inp.reshape(b * s, p_len)
    conv_in = embed(path_flat, params['emb1'], params['pe'], E1)     # (b*s, p, E1)
    path_encode = path_conv_encode_pallas(
        conv_in, params['conv_w_comb'], params['conv_b_comb'],
        params['path_lin_w_t'], params['path_lin_b'],
        window_sizes=WINDOW_SIZES)                                   # (b*s, E1)

    src = jnp.concatenate([code_encode, path_encode], axis=-1)       # (b*s, E)
    nl = len(params['layers'])
    prob = None
    for i, lp in enumerate(params['layers']):
        if i == nl - 1:
            src, prob = encoder_layer_pallas(src, lp, seq_len=s, batch=b,
                                             dec_w_t=params['dec_w_t'],
                                             dec_b=params['dec_b'])
        else:
            src = encoder_layer_pallas(src, lp, seq_len=s, batch=b)
    return prob


# ---------------------------- parameter creation -----------------------------
def init_params(key):
    keys = jax.random.split(key, 64)
    ki = iter(keys)

    def nrm(shape, scale=0.1):
        return scale * jax.random.normal(next(ki), shape, jnp.float32)

    assert EMSIZES[0] == EMSIZES[1], "shared PE table assumes equal emsizes"

    p = {}
    p['pe'] = positional_encoding(64, EMSIZES[0])
    p['emb0'] = nrm((NTOKENS[0], EMSIZES[0]))
    p['emb1'] = nrm((NTOKENS[1], EMSIZES[1]))

    # Conv1d weights (torch layout (C_out, C_in, k)) combined into one im2col
    # matrix: rows = k*Cin + c_in (zero-padded to KMAX taps), cols window-major.
    cin = cout = EMSIZES[1]
    nwin = len(WINDOW_SIZES)
    wcomb = jnp.zeros((KMAX * cin, nwin * cout), jnp.float32)
    bcomb = jnp.zeros((nwin * cout,), jnp.float32)
    for j, h in enumerate(WINDOW_SIZES):
        w_torch = nrm((cout, cin, h))                          # PyTorch Conv1d layout
        w_kio = jnp.transpose(w_torch, (2, 1, 0)).reshape(h * cin, cout)
        wcomb = wcomb.at[:h * cin, j * cout:(j + 1) * cout].set(w_kio)
        bcomb = bcomb.at[j * cout:(j + 1) * cout].set(nrm((cout,)))
    p['conv_w_comb'] = wcomb
    p['conv_b_comb'] = bcomb

    p['path_lin_w_t'] = nrm((nwin * cout, EMSIZES[1]))
    p['path_lin_b'] = jnp.zeros((EMSIZES[1],), jnp.float32)

    E = EMSIZE
    layers = []
    for _ in range(NLAYERS):
        layers.append({
            'in_proj_w_t': nrm((E, 3 * E)),
            'in_proj_b': jnp.zeros((3 * E,), jnp.float32),
            'out_proj_w_t': nrm((E, E)),
            'out_proj_b': jnp.zeros((E,), jnp.float32),
            'ff1_w_t': nrm((E, NHID)),
            'ff1_b': jnp.zeros((NHID,), jnp.float32),
            'ff2_w_t': nrm((NHID, E)),
            'ff2_b': jnp.zeros((E,), jnp.float32),
            'ln1_g': jnp.ones((E,), jnp.float32),
            'ln1_b': jnp.zeros((E,), jnp.float32),
            'ln2_g': jnp.ones((E,), jnp.float32),
            'ln2_b': jnp.zeros((E,), jnp.float32),
        })
    p['layers'] = layers
    p['dec_w_t'] = nrm((E, NCLS))
    p['dec_b'] = jnp.zeros((NCLS,), jnp.float32)
    return p


# ----------------------------------- main ------------------------------------
if __name__ == "__main__":
    key = jax.random.PRNGKey(0)
    kp, kc, kpath = jax.random.split(key, 3)

    params = init_params(kp)

    batch = 2
    num_paths = 4                 # also the code sequence length (must match)
    code_inp = jax.random.randint(kc, (batch, num_paths), 0, NTOKENS[0], jnp.int32)
    path_inp = jax.random.randint(kpath, (batch, num_paths, PATH_LEN), 0,
                                  NTOKENS[1], jnp.int32)

    prob = hit_conv1d_forward(params, code_inp, path_inp)
    prob = jax.block_until_ready(prob)

    assert prob.shape == (batch, NCLS)
    assert bool(jnp.all(jnp.isfinite(prob)))
    # rows of `prob` sum to 1 (softmax over classes)
    assert bool(jnp.allclose(jnp.sum(prob, axis=1), 1.0, atol=1e-5))
    print("KERNEL_OK")
</pallas_src>

<mosaic_0001>
module attributes {stable_mosaic.version = 11 : i64} {
  func.func @_path_conv_kernel(%arg0: memref<196x16xf32, #tpu.memory_space<vmem>>, %arg1: memref<80x64xf32, #tpu.memory_space<vmem>>, %arg2: memref<1x64xf32, #tpu.memory_space<vmem>>, %arg3: memref<1x64xi32, #tpu.memory_space<vmem>>, %arg4: memref<64x16xf32, #tpu.memory_space<vmem>>, %arg5: memref<1x16xf32, #tpu.memory_space<vmem>>, %arg6: memref<8x16xf32, #tpu.memory_space<vmem>>) attributes {dimension_semantics = [], scalar_prefetch = 0 : i64, scratch_operands = 0 : i64, tpu.core_type = #tpu.core_type<tc>} {
    %c0 = arith.constant 0 : index
    %c0_0 = arith.constant 0 : index
    %0 = vector.load %arg0[%c0, %c0_0] : memref<196x16xf32, #tpu.memory_space<vmem>>, vector<196x16xf32>
    %1 = vector.extract_strided_slice %0 {offsets = [0, 0], sizes = [192, 16], strides = [1, 1]} : vector<196x16xf32> to vector<192x16xf32>
    %2 = vector.extract_strided_slice %0 {offsets = [1, 0], sizes = [192, 16], strides = [1, 1]} : vector<196x16xf32> to vector<192x16xf32>
    %3 = vector.extract_strided_slice %0 {offsets = [2, 0], sizes = [192, 16], strides = [1, 1]} : vector<196x16xf32> to vector<192x16xf32>
    %4 = vector.extract_strided_slice %0 {offsets = [3, 0], sizes = [192, 16], strides = [1, 1]} : vector<196x16xf32> to vector<192x16xf32>
    %5 = vector.extract_strided_slice %0 {offsets = [4, 0], sizes = [192, 16], strides = [1, 1]} : vector<196x16xf32> to vector<192x16xf32>
    %6 = tpu.concatenate %1, %2, %3, %4, %5 in 1 : vector<192x16xf32>, vector<192x16xf32>, vector<192x16xf32>, vector<192x16xf32>, vector<192x16xf32> -> vector<192x80xf32>
    %c0_1 = arith.constant 0 : index
    %c0_2 = arith.constant 0 : index
    %7 = vector.load %arg1[%c0_1, %c0_2] : memref<80x64xf32, #tpu.memory_space<vmem>>, vector<80x64xf32>
    %cst = arith.constant dense<0.000000e+00> : vector<192x64xf32>
    %8 = tpu.matmul %6, %7, %cst {dimension_numbers = #tpu.dot_dimension_numbers<[1], [0], [0], [1], [0, 0, 1, 1], [], []>} : vector<192x80xf32>, vector<80x64xf32>, vector<192x64xf32> -> vector<192x64xf32>
    %c0_3 = arith.constant 0 : index
    %c0_4 = arith.constant 0 : index
    %9 = vector.load %arg2[%c0_3, %c0_4] : memref<1x64xf32, #tpu.memory_space<vmem>>, vector<1x64xf32>
    %10 = vector.broadcast %9 : vector<1x64xf32> to vector<192x64xf32>
    %11 = arith.addf %8, %10 : vector<192x64xf32>
    %cst_5 = arith.constant 0.000000e+00 : f32
    %12 = vector.broadcast %cst_5 : f32 to vector<192x64xf32>
    %13 = arith.maximumf %11, %12 : vector<192x64xf32>
    %14 = tpu.iota {dimensions = array<i32: 0>} : vector<24x64xi32>
    %c0_6 = arith.constant 0 : index
    %c0_7 = arith.constant 0 : index
    %15 = vector.load %arg3[%c0_6, %c0_7] : memref<1x64xi32, #tpu.memory_space<vmem>>, vector<1x64xi32>
    %16 = vector.broadcast %15 : vector<1x64xi32> to vector<24x64xi32>
    %17 = arith.cmpi slt, %14, %16 : vector<24x64xi32>
    %18 = vector.extract_strided_slice %13 {offsets = [0, 0], sizes = [24, 64], strides = [1, 1]} : vector<192x64xf32> to vector<24x64xf32>
    %cst_8 = arith.constant 0.000000e+00 : f32
    %19 = vector.broadcast %cst_8 : f32 to vector<24x64xf32>
    %20 = arith.select %17, %18, %19 : vector<24x64xi1>, vector<24x64xf32>
    %cst_9 = arith.constant dense<0xFF800000> : vector<64xf32>
    %21 = vector.multi_reduction <maximumf>, %20, %cst_9 [0] : vector<24x64xf32> to vector<64xf32>
    %22 = vector.shape_cast %21 : vector<64xf32> to vector<1x64xf32>
    %23 = vector.extract_strided_slice %13 {offsets = [24, 0], sizes = [24, 64], strides = [1, 1]} : vector<192x64xf32> to vector<24x64xf32>
    %cst_10 = arith.constant 0.000000e+00 : f32
    %24 = vector.broadcast %cst_10 : f32 to vector<24x64xf32>
    %25 = arith.select %17, %23, %24 : vector<24x64xi1>, vector<24x64xf32>
    %cst_11 = arith.constant dense<0xFF800000> : vector<64xf32>
    %26 = vector.multi_reduction <maximumf>, %25, %cst_11 [0] : vector<24x64xf32> to vector<64xf32>
    %27 = vector.shape_cast %26 : vector<64xf32> to vector<1x64xf32>
    %28 = vector.extract_strided_slice %13 {offsets = [48, 0], sizes = [24, 64], strides = [1, 1]} : vector<192x64xf32> to vector<24x64xf32>
    %cst_12 = arith.constant 0.000000e+00 : f32
    %29 = vector.broadcast %cst_12 : f32 to vector<24x64xf32>
    %30 = arith.select %17, %28, %29 : vector<24x64xi1>, vector<24x64xf32>
    %cst_13 = arith.constant dense<0xFF800000> : vector<64xf32>
    %31 = vector.multi_reduction <maximumf>, %30, %cst_13 [0] : vector<24x64xf32> to vector<64xf32>
    %32 = vector.shape_cast %31 : vector<64xf32> to vector<1x64xf32>
    %33 = vector.extract_strided_slice %13 {offsets = [72, 0], sizes = [24, 64], strides = [1, 1]} : vector<192x64xf32> to vector<24x64xf32>
    %cst_14 = arith.constant 0.000000e+00 : f32
    %34 = vector.broadcast %cst_14 : f32 to vector<24x64xf32>
    %35 = arith.select %17, %33, %34 : vector<24x64xi1>, vector<24x64xf32>
    %cst_15 = arith.constant dense<0xFF800000> : vector<64xf32>
    %36 = vector.multi_reduction <maximumf>, %35, %cst_15 [0] : vector<24x64xf32> to vector<64xf32>
    %37 = vector.shape_cast %36 : vector<64xf32> to vector<1x64xf32>
    %38 = vector.extract_strided_slice %13 {offsets = [96, 0], sizes = [24, 64], strides = [1, 1]} : vector<192x64xf32> to vector<24x64xf32>
    %cst_16 = arith.constant 0.000000e+00 : f32
    %39 = vector.broadcast %cst_16 : f32 to vector<24x64xf32>
    %40 = arith.select %17, %38, %39 : vector<24x64xi1>, vector<24x64xf32>
    %cst_17 = arith.constant dense<0xFF800000> : vector<64xf32>
    %41 = vector.multi_reduction <maximumf>, %40, %cst_17 [0] : vector<24x64xf32> to vector<64xf32>
    %42 = vector.shape_cast %41 : vector<64xf32> to vector<1x64xf32>
    %43 = vector.extract_strided_slice %13 {offsets = [120, 0], sizes = [24, 64], strides = [1, 1]} : vector<192x64xf32> to vector<24x64xf32>
    %cst_18 = arith.constant 0.000000e+00 : f32
    %44 = vector.broadcast %cst_18 : f32 to vector<24x64xf32>
    %45 = arith.select %17, %43, %44 : vector<24x64xi1>, vector<24x64xf32>
    %cst_19 = arith.constant dense<0xFF800000> : vector<64xf32>
    %46 = vector.multi_reduction <maximumf>, %45, %cst_19 [0] : vector<24x64xf32> to vector<64xf32>
    %47 = vector.shape_cast %46 : vector<64xf32> to vector<1x64xf32>
    %48 = vector.extract_strided_slice %13 {offsets = [144, 0], sizes = [24, 64], strides = [1, 1]} : vector<192x64xf32> to vector<24x64xf32>
    %cst_20 = arith.constant 0.000000e+00 : f32
    %49 = vector.broadcast %cst_20 : f32 to vector<24x64xf32>
    %50 = arith.select %17, %48, %49 : vector<24x64xi1>, vector<24x64xf32>
    %cst_21 = arith.constant dense<0xFF800000> : vector<64xf32>
    %51 = vector.multi_reduction <maximumf>, %50, %cst_21 [0] : vector<24x64xf32> to vector<64xf32>
    %52 = vector.shape_cast %51 : vector<64xf32> to vector<1x64xf32>
    %53 = vector.extract_strided_slice %13 {offsets = [168, 0], sizes = [24, 64], strides = [1, 1]} : vector<192x64xf32> to vector<24x64xf32>
    %cst_22 = arith.constant 0.000000e+00 : f32
    %54 = vector.broadcast %cst_22 : f32 to vector<24x64xf32>
    %55 = arith.select %17, %53, %54 : vector<24x64xi1>, vector<24x64xf32>
    %cst_23 = arith.constant dense<0xFF800000> : vector<64xf32>
    %56 = vector.multi_reduction <maximumf>, %55, %cst_23 [0] : vector<24x64xf32> to vector<64xf32>
    %57 = vector.shape_cast %56 : vector<64xf32> to vector<1x64xf32>
    %58 = tpu.concatenate %22, %27, %32, %37, %42, %47, %52, %57 in 0 : vector<1x64xf32>, vector<1x64xf32>, vector<1x64xf32>, vector<1x64xf32>, vector<1x64xf32>, vector<1x64xf32>, vector<1x64xf32>, vector<1x64xf32> -> vector<8x64xf32>
    %c0_24 = arith.constant 0 : index
    %c0_25 = arith.constant 0 : index
    %59 = vector.load %arg4[%c0_24, %c0_25] : memref<64x16xf32, #tpu.memory_space<vmem>>, vector<64x16xf32>
    %cst_26 = arith.constant dense<0.000000e+00> : vector<8x16xf32>
    %60 = tpu.matmul %58, %59, %cst_26 {dimension_numbers = #tpu.dot_dimension_numbers<[1], [0], [0], [1], [0, 0, 1, 1], [], []>} : vector<8x64xf32>, vector<64x16xf32>, vector<8x16xf32> -> vector<8x16xf32>
    %c0_27 = arith.constant 0 : index
    %c0_28 = arith.constant 0 : index
    %61 = vector.load %arg5[%c0_27, %c0_28] : memref<1x16xf32, #tpu.memory_space<vmem>>, vector<1x16xf32>
    %62 = vector.broadcast %61 : vector<1x16xf32> to vector<8x16xf32>
    %63 = arith.addf %60, %62 : vector<8x16xf32>
    %c0_29 = arith.constant 0 : index
    %c0_30 = arith.constant 0 : index
    %64 = vector.load %arg6[%c0_29, %c0_30] : memref<8x16xf32, #tpu.memory_space<vmem>>, vector<8x16xf32>
    tpu.vector_store %arg6[%c0_29, %c0_30], %63 {strides = array<i32>} : memref<8x16xf32, #tpu.memory_space<vmem>>, vector<8x16xf32>,
    return
  }
}

module attributes {stable_mosaic.version = 11 : i64} {
  func.func @_encoder_layer_kernel(%arg0: memref<8x32xf32, #tpu.memory_space<vmem>>, %arg1: memref<32x96xf32, #tpu.memory_space<vmem>>, %arg2: memref<1x96xf32, #tpu.memory_space<vmem>>, %arg3: memref<32x32xf32, #tpu.memory_space<vmem>>, %arg4: memref<1x32xf32, #tpu.memory_space<vmem>>, %arg5: memref<1x32xf32, #tpu.memory_space<vmem>>, %arg6: memref<1x32xf32, #tpu.memory_space<vmem>>, %arg7: memref<32x64xf32, #tpu.memory_space<vmem>>, %arg8: memref<1x64xf32, #tpu.memory_space<vmem>>, %arg9: memref<64x32xf32, #tpu.memory_space<vmem>>, %arg10: memref<1x32xf32, #tpu.memory_space<vmem>>, %arg11: memref<1x32xf32, #tpu.memory_space<vmem>>, %arg12: memref<1x32xf32, #tpu.memory_space<vmem>>, %arg13: memref<32x4xf32, #tpu.memory_space<vmem>>, %arg14: memref<1x4xf32, #tpu.memory_space<vmem>>, %arg15: memref<8x32xf32, #tpu.memory_space<vmem>>, %arg16: memref<2x4xf32, #tpu.memory_space<vmem>>) attributes {dimension_semantics = [], scalar_prefetch = 0 : i64, scratch_operands = 0 : i64, tpu.core_type = #tpu.core_type<tc>} {
    %c0 = arith.constant 0 : index
    %c0_0 = arith.constant 0 : index
    %0 = vector.load %arg0[%c0, %c0_0] : memref<8x32xf32, #tpu.memory_space<vmem>>, vector<8x32xf32>
    %c0_1 = arith.constant 0 : index
    %c0_2 = arith.constant 0 : index
    %1 = vector.load %arg1[%c0_1, %c0_2] : memref<32x96xf32, #tpu.memory_space<vmem>>, vector<32x96xf32>
    %cst = arith.constant dense<0.000000e+00> : vector<8x96xf32>
    %2 = tpu.matmul %0, %1, %cst {dimension_numbers = #tpu.dot_dimension_numbers<[1], [0], [0], [1], [0, 0, 1, 1], [], []>} : vector<8x32xf32>, vector<32x96xf32>, vector<8x96xf32> -> vector<8x96xf32>
    %c0_3 = arith.constant 0 : index
    %c0_4 = arith.constant 0 : index
    %3 = vector.load %arg2[%c0_3, %c0_4] : memref<1x96xf32, #tpu.memory_space<vmem>>, vector<1x96xf32>
    %4 = vector.broadcast %3 : vector<1x96xf32> to vector<8x96xf32>
    %5 = arith.addf %2, %4 : vector<8x96xf32>
    %6 = vector.extract_strided_slice %5 {offsets = [0, 0], sizes = [4, 16], strides = [1, 1]} : vector<8x96xf32> to vector<4x16xf32>
    %cst_5 = arith.constant 2.500000e-01 : f32
    %7 = vector.broadcast %cst_5 : f32 to vector<4x16xf32>
    %8 = arith.mulf %6, %7 : vector<4x16xf32>
    %9 = vector.extract_strided_slice %5 {offsets = [0, 32], sizes = [4, 16], strides = [1, 1]} : vector<8x96xf32> to vector<4x16xf32>
    %10 = vector.extract_strided_slice %5 {offsets = [0, 64], sizes = [4, 16], strides = [1, 1]} : vector<8x96xf32> to vector<4x16xf32>
    %cst_6 = arith.constant dense<0.000000e+00> : vector<4x4xf32>
    %11 = tpu.matmul %8, %9, %cst_6 {dimension_numbers = #tpu.dot_dimension_numbers<[1], [1], [0], [0], [0, 0, 1, 0], [], []>} : vector<4x16xf32>, vector<4x16xf32>, vector<4x4xf32> -> vector<4x4xf32>
    %cst_7 = arith.constant dense<0xFF800000> : vector<4xf32>
    %12 = vector.multi_reduction <maximumf>, %11, %cst_7 [1] : vector<4x4xf32> to vector<4xf32>
    %13 = vector.shape_cast %12 : vector<4xf32> to vector<4x1xf32>
    %14 = vector.broadcast %13 : vector<4x1xf32> to vector<4x4xf32>
    %15 = arith.subf %11, %14 : vector<4x4xf32>
    %16 = math.exp %15 : vector<4x4xf32>
    %cst_8 = arith.constant dense<0.000000e+00> : vector<4xf32>
    %17 = vector.multi_reduction <add>, %16, %cst_8 [1] : vector<4x4xf32> to vector<4xf32>
    %18 = vector.shape_cast %17 : vector<4xf32> to vector<4x1xf32>
    %19 = vector.broadcast %18 : vector<4x1xf32> to vector<4x4xf32>
    %20 = arith.divf %16, %19 : vector<4x4xf32>
    %cst_9 = arith.constant dense<0.000000e+00> : vector<4x16xf32>
    %21 = tpu.matmul %20, %10, %cst_9 {dimension_numbers = #tpu.dot_dimension_numbers<[1], [0], [0], [1], [0, 0, 1, 1], [], []>} : vector<4x4xf32>, vector<4x16xf32>, vector<4x16xf32> -> vector<4x16xf32>
    %22 = vector.extract_strided_slice %5 {offsets = [0, 16], sizes = [4, 16], strides = [1, 1]} : vector<8x96xf32> to vector<4x16xf32>
    %cst_10 = arith.constant 2.500000e-01 : f32
    %23 = vector.broadcast %cst_10 : f32 to vector<4x16xf32>
    %24 = arith.mulf %22, %23 : vector<4x16xf32>
    %25 = vector.extract_strided_slice %5 {offsets = [0, 48], sizes = [4, 16], strides = [1, 1]} : vector<8x96xf32> to vector<4x16xf32>
    %26 = vector.extract_strided_slice %5 {offsets = [0, 80], sizes = [4, 16], strides = [1, 1]} : vector<8x96xf32> to vector<4x16xf32>
    %cst_11 = arith.constant dense<0.000000e+00> : vector<4x4xf32>
    %27 = tpu.matmul %24, %25, %cst_11 {dimension_numbers = #tpu.dot_dimension_numbers<[1], [1], [0], [0], [0, 0, 1, 0], [], []>} : vector<4x16xf32>, vector<4x16xf32>, vector<4x4xf32> -> vector<4x4xf32>
    %cst_12 = arith.constant dense<0xFF800000> : vector<4xf32>
    %28 = vector.multi_reduction <maximumf>, %27, %cst_12 [1] : vector<4x4xf32> to vector<4xf32>
    %29 = vector.shape_cast %28 : vector<4xf32> to vector<4x1xf32>
    %30 = vector.broadcast %29 : vector<4x1xf32> to vector<4x4xf32>
    %31 = arith.subf %27, %30 : vector<4x4xf32>
    %32 = math.exp %31 : vector<4x4xf32>
    %cst_13 = arith.constant dense<0.000000e+00> : vector<4xf32>
    %33 = vector.multi_reduction <add>, %32, %cst_13 [1] : vector<4x4xf32> to vector<4xf32>
    %34 = vector.shape_cast %33 : vector<4xf32> to vector<4x1xf32>
    %35 = vector.broadcast %34 : vector<4x1xf32> to vector<4x4xf32>
    %36 = arith.divf %32, %35 : vector<4x4xf32>
    %cst_14 = arith.constant dense<0.000000e+00> : vector<4x16xf32>
    %37 = tpu.matmul %36, %26, %cst_14 {dimension_numbers = #tpu.dot_dimension_numbers<[1], [0], [0], [1], [0, 0, 1, 1], [], []>} : vector<4x4xf32>, vector<4x16xf32>, vector<4x16xf32> -> vector<4x16xf32>
    %38 = tpu.concatenate %21, %37 in 1 : vector<4x16xf32>, vector<4x16xf32> -> vector<4x32xf32>
    %39 = vector.extract_strided_slice %5 {offsets = [4, 0], sizes = [4, 16], strides = [1, 1]} : vector<8x96xf32> to vector<4x16xf32>
    %cst_15 = arith.constant 2.500000e-01 : f32
    %40 = vector.broadcast %cst_15 : f32 to vector<4x16xf32>
    %41 = arith.mulf %39, %40 : vector<4x16xf32>
    %42 = vector.extract_strided_slice %5 {offsets = [4, 32], sizes = [4, 16], strides = [1, 1]} : vector<8x96xf32> to vector<4x16xf32>
    %43 = vector.extract_strided_slice %5 {offsets = [4, 64], sizes = [4, 16], strides = [1, 1]} : vector<8x96xf32> to vector<4x16xf32>
    %cst_16 = arith.constant dense<0.000000e+00> : vector<4x4xf32>
    %44 = tpu.matmul %41, %42, %cst_16 {dimension_numbers = #tpu.dot_dimension_numbers<[1], [1], [0], [0], [0, 0, 1, 0], [], []>} : vector<4x16xf32>, vector<4x16xf32>, vector<4x4xf32> -> vector<4x4xf32>
    %cst_17 = arith.constant dense<0xFF800000> : vector<4xf32>
    %45 = vector.multi_reduction <maximumf>, %44, %cst_17 [1] : vector<4x4xf32> to vector<4xf32>
    %46 = vector.shape_cast %45 : vector<4xf32> to vector<4x1xf32>
    %47 = vector.broadcast %46 : vector<4x1xf32> to vector<4x4xf32>
    %48 = arith.subf %44, %47 : vector<4x4xf32>
    %49 = math.exp %48 : vector<4x4xf32>
    %cst_18 = arith.constant dense<0.000000e+00> : vector<4xf32>
    %50 = vector.multi_reduction <add>, %49, %cst_18 [1] : vector<4x4xf32> to vector<4xf32>
    %51 = vector.shape_cast %50 : vector<4xf32> to vector<4x1xf32>
    %52 = vector.broadcast %51 : vector<4x1xf32> to vector<4x4xf32>
    %53 = arith.divf %49, %52 : vector<4x4xf32>
    %cst_19 = arith.constant dense<0.000000e+00> : vector<4x16xf32>
    %54 = tpu.matmul %53, %43, %cst_19 {dimension_numbers = #tpu.dot_dimension_numbers<[1], [0], [0], [1], [0, 0, 1, 1], [], []>} : vector<4x4xf32>, vector<4x16xf32>, vector<4x16xf32> -> vector<4x16xf32>
    %55 = vector.extract_strided_slice %5 {offsets = [4, 16], sizes = [4, 16], strides = [1, 1]} : vector<8x96xf32> to vector<4x16xf32>
    %cst_20 = arith.constant 2.500000e-01 : f32
    %56 = vector.broadcast %cst_20 : f32 to vector<4x16xf32>
    %57 = arith.mulf %55, %56 : vector<4x16xf32>
    %58 = vector.extract_strided_slice %5 {offsets = [4, 48], sizes = [4, 16], strides = [1, 1]} : vector<8x96xf32> to vector<4x16xf32>
    %59 = vector.extract_strided_slice %5 {offsets = [4, 80], sizes = [4, 16], strides = [1, 1]} : vector<8x96xf32> to vector<4x16xf32>
    %cst_21 = arith.constant dense<0.000000e+00> : vector<4x4xf32>
    %60 = tpu.matmul %57, %58, %cst_21 {dimension_numbers = #tpu.dot_dimension_numbers<[1], [1], [0], [0], [0, 0, 1, 0], [], []>} : vector<4x16xf32>, vector<4x16xf32>, vector<4x4xf32> -> vector<4x4xf32>
    %cst_22 = arith.constant dense<0xFF800000> : vector<4xf32>
    %61 = vector.multi_reduction <maximumf>, %60, %cst_22 [1] : vector<4x4xf32> to vector<4xf32>
    %62 = vector.shape_cast %61 : vector<4xf32> to vector<4x1xf32>
    %63 = vector.broadcast %62 : vector<4x1xf32> to vector<4x4xf32>
    %64 = arith.subf %60, %63 : vector<4x4xf32>
    %65 = math.exp %64 : vector<4x4xf32>
    %cst_23 = arith.constant dense<0.000000e+00> : vector<4xf32>
    %66 = vector.multi_reduction <add>, %65, %cst_23 [1] : vector<4x4xf32> to vector<4xf32>
    %67 = vector.shape_cast %66 : vector<4xf32> to vector<4x1xf32>
    %68 = vector.broadcast %67 : vector<4x1xf32> to vector<4x4xf32>
    %69 = arith.divf %65, %68 : vector<4x4xf32>
    %cst_24 = arith.constant dense<0.000000e+00> : vector<4x16xf32>
    %70 = tpu.matmul %69, %59, %cst_24 {dimension_numbers = #tpu.dot_dimension_numbers<[1], [0], [0], [1], [0, 0, 1, 1], [], []>} : vector<4x4xf32>, vector<4x16xf32>, vector<4x16xf32> -> vector<4x16xf32>
    %71 = tpu.concatenate %54, %70 in 1 : vector<4x16xf32>, vector<4x16xf32> -> vector<4x32xf32>
    %72 = tpu.concatenate %38, %71 in 0 : vector<4x32xf32>, vector<4x32xf32> -> vector<8x32xf32>
    %c0_25 = arith.constant 0 : index
    %c0_26 = arith.constant 0 : index
    %73 = vector.load %arg3[%c0_25, %c0_26] : memref<32x32xf32, #tpu.memory_space<vmem>>, vector<32x32xf32>
    %cst_27 = arith.constant dense<0.000000e+00> : vector<8x32xf32>
    %74 = tpu.matmul %72, %73, %cst_27 {dimension_numbers = #tpu.dot_dimension_numbers<[1], [0], [0], [1], [0, 0, 1, 1], [], []>} : vector<8x32xf32>, vector<32x32xf32>, vector<8x32xf32> -> vector<8x32xf32>
    %c0_28 = arith.constant 0 : index
    %c0_29 = arith.constant 0 : index
    %75 = vector.load %arg4[%c0_28, %c0_29] : memref<1x32xf32, #tpu.memory_space<vmem>>, vector<1x32xf32>
    %76 = vector.broadcast %75 : vector<1x32xf32> to vector<8x32xf32>
    %77 = arith.addf %74, %76 : vector<8x32xf32>
    %78 = arith.addf %0, %77 : vector<8x32xf32>
    %c0_30 = arith.constant 0 : index
    %c0_31 = arith.constant 0 : index
    %79 = vector.load %arg5[%c0_30, %c0_31] : memref<1x32xf32, #tpu.memory_space<vmem>>, vector<1x32xf32>
    %c0_32 = arith.constant 0 : index
    %c0_33 = arith.constant 0 : index
    %80 = vector.load %arg6[%c0_32, %c0_33] : memref<1x32xf32, #tpu.memory_space<vmem>>, vector<1x32xf32>
    %cst_34 = arith.constant dense<0.000000e+00> : vector<8xf32>
    %81 = vector.multi_reduction <add>, %78, %cst_34 [1] : vector<8x32xf32> to vector<8xf32>
    %82 = vector.shape_cast %81 : vector<8xf32> to vector<8x1xf32>
    %cst_35 = arith.constant 3.200000e+01 : f32
    %83 = vector.broadcast %cst_35 : f32 to vector<8x1xf32>
    %84 = arith.divf %82, %83 : vector<8x1xf32>
    %85 = vector.broadcast %84 : vector<8x1xf32> to vector<8x32xf32>
    %86 = arith.subf %78, %85 : vector<8x32xf32>
    %87 = arith.mulf %86, %86 : vector<8x32xf32>
    %cst_36 = arith.constant dense<0.000000e+00> : vector<8xf32>
    %88 = vector.multi_reduction <add>, %87, %cst_36 [1] : vector<8x32xf32> to vector<8xf32>
    %89 = vector.shape_cast %88 : vector<8xf32> to vector<8x1xf32>
    %cst_37 = arith.constant 3.200000e+01 : f32
    %90 = vector.broadcast %cst_37 : f32 to vector<8x1xf32>
    %91 = arith.divf %89, %90 : vector<8x1xf32>
    %92 = vector.broadcast %84 : vector<8x1xf32> to vector<8x32xf32>
    %93 = arith.subf %78, %92 : vector<8x32xf32>
    %cst_38 = arith.constant 9.99999974E-6 : f32
    %94 = vector.broadcast %cst_38 : f32 to vector<8x1xf32>
    %95 = arith.addf %91, %94 : vector<8x1xf32>
    %96 = math.rsqrt %95 : vector<8x1xf32>
    %97 = vector.broadcast %96 : vector<8x1xf32> to vector<8x32xf32>
    %98 = arith.mulf %93, %97 : vector<8x32xf32>
    %99 = vector.broadcast %79 : vector<1x32xf32> to vector<8x32xf32>
    %100 = arith.mulf %98, %99 : vector<8x32xf32>
    %101 = vector.broadcast %80 : vector<1x32xf32> to vector<8x32xf32>
    %102 = arith.addf %100, %101 : vector<8x32xf32>
    %c0_39 = arith.constant 0 : index
    %c0_40 = arith.constant 0 : index
    %103 = vector.load %arg7[%c0_39, %c0_40] : memref<32x64xf32, #tpu.memory_space<vmem>>, vector<32x64xf32>
    %cst_41 = arith.constant dense<0.000000e+00> : vector<8x64xf32>
    %104 = tpu.matmul %102, %103, %cst_41 {dimension_numbers = #tpu.dot_dimension_numbers<[1], [0], [0], [1], [0, 0, 1, 1], [], []>} : vector<8x32xf32>, vector<32x64xf32>, vector<8x64xf32> -> vector<8x64xf32>
    %c0_42 = arith.constant 0 : index
    %c0_43 = arith.constant 0 : index
    %105 = vector.load %arg8[%c0_42, %c0_43] : memref<1x64xf32, #tpu.memory_space<vmem>>, vector<1x64xf32>
    %106 = vector.broadcast %105 : vector<1x64xf32> to vector<8x64xf32>
    %107 = arith.addf %104, %106 : vector<8x64xf32>
    %cst_44 = arith.constant 0.000000e+00 : f32
    %108 = vector.broadcast %cst_44 : f32 to vector<8x64xf32>
    %109 = arith.maximumf %107, %108 : vector<8x64xf32>
    %c0_45 = arith.constant 0 : index
    %c0_46 = arith.constant 0 : index
    %110 = vector.load %arg9[%c0_45, %c0_46] : memref<64x32xf32, #tpu.memory_space<vmem>>, vector<64x32xf32>
    %cst_47 = arith.constant dense<0.000000e+00> : vector<8x32xf32>
    %111 = tpu.matmul %109, %110, %cst_47 {dimension_numbers = #tpu.dot_dimension_numbers<[1], [0], [0], [1], [0, 0, 1, 1], [], []>} : vector<8x64xf32>, vector<64x32xf32>, vector<8x32xf32> -> vector<8x32xf32>
    %c0_48 = arith.constant 0 : index
    %c0_49 = arith.constant 0 : index
    %112 = vector.load %arg10[%c0_48, %c0_49] : memref<1x32xf32, #tpu.memory_space<vmem>>, vector<1x32xf32>
    %113 = vector.broadcast %112 : vector<1x32xf32> to vector<8x32xf32>
    %114 = arith.addf %111, %113 : vector<8x32xf32>
    %115 = arith.addf %102, %114 : vector<8x32xf32>
    %c0_50 = arith.constant 0 : index
    %c0_51 = arith.constant 0 : index
    %116 = vector.load %arg11[%c0_50, %c0_51] : memref<1x32xf32, #tpu.memory_space<vmem>>, vector<1x32xf32>
    %c0_52 = arith.constant 0 : index
    %c0_53 = arith.constant 0 : index
    %117 = vector.load %arg12[%c0_52, %c0_53] : memref<1x32xf32, #tpu.memory_space<vmem>>, vector<1x32xf32>
    %cst_54 = arith.constant dense<0.000000e+00> : vector<8xf32>
    %118 = vector.multi_reduction <add>, %115, %cst_54 [1] : vector<8x32xf32> to vector<8xf32>
    %119 = vector.shape_cast %118 : vector<8xf32> to vector<8x1xf32>
    %cst_55 = arith.constant 3.200000e+01 : f32
    %120 = vector.broadcast %cst_55 : f32 to vector<8x1xf32>
    %121 = arith.divf %119, %120 : vector<8x1xf32>
    %122 = vector.broadcast %121 : vector<8x1xf32> to vector<8x32xf32>
    %123 = arith.subf %115, %122 : vector<8x32xf32>
    %124 = arith.mulf %123, %123 : vector<8x32xf32>
    %cst_56 = arith.constant dense<0.000000e+00> : vector<8xf32>
    %125 = vector.multi_reduction <add>, %124, %cst_56 [1] : vector<8x32xf32> to vector<8xf32>
    %126 = vector.shape_cast %125 : vector<8xf32> to vector<8x1xf32>
    %cst_57 = arith.constant 3.200000e+01 : f32
    %127 = vector.broadcast %cst_57 : f32 to vector<8x1xf32>
    %128 = arith.divf %126, %127 : vector<8x1xf32>
    %129 = vector.broadcast %121 : vector<8x1xf32> to vector<8x32xf32>
    %130 = arith.subf %115, %129 : vector<8x32xf32>
    %cst_58 = arith.constant 9.99999974E-6 : f32
    %131 = vector.broadcast %cst_58 : f32 to vector<8x1xf32>
    %132 = arith.addf %128, %131 : vector<8x1xf32>
    %133 = math.rsqrt %132 : vector<8x1xf32>
    %134 = vector.broadcast %133 : vector<8x1xf32> to vector<8x32xf32>
    %135 = arith.mulf %130, %134 : vector<8x32xf32>
    %136 = vector.broadcast %116 : vector<1x32xf32> to vector<8x32xf32>
    %137 = arith.mulf %135, %136 : vector<8x32xf32>
    %138 = vector.broadcast %117 : vector<1x32xf32> to vector<8x32xf32>
    %139 = arith.addf %137, %138 : vector<8x32xf32>
    %c0_59 = arith.constant 0 : index
    %c0_60 = arith.constant 0 : index
    %140 = vector.load %arg15[%c0_59, %c0_60] : memref<8x32xf32, #tpu.memory_space<vmem>>, vector<8x32xf32>
    tpu.vector_store %arg15[%c0_59, %c0_60], %139 {strides = array<i32>} : memref<8x32xf32, #tpu.memory_space<vmem>>, vector<8x32xf32>,
    %141 = vector.extract_strided_slice %139 {offsets = [0, 0], sizes = [1, 32], strides = [1, 1]} : vector<8x32xf32> to vector<1x32xf32>
    %142 = vector.extract_strided_slice %139 {offsets = [4, 0], sizes = [1, 32], strides = [1, 1]} : vector<8x32xf32> to vector<1x32xf32>
    %143 = tpu.concatenate %141, %142 in 0 : vector<1x32xf32>, vector<1x32xf32> -> vector<2x32xf32>
    %c0_61 = arith.constant 0 : index
    %c0_62 = arith.constant 0 : index
    %144 = vector.load %arg13[%c0_61, %c0_62] : memref<32x4xf32, #tpu.memory_space<vmem>>, vector<32x4xf32>
    %cst_63 = arith.constant dense<0.000000e+00> : vector<2x4xf32>
    %145 = tpu.matmul %143, %144, %cst_63 {dimension_numbers = #tpu.dot_dimension_numbers<[1], [0], [0], [1], [0, 0, 1, 1], [], []>} : vector<2x32xf32>, vector<32x4xf32>, vector<2x4xf32> -> vector<2x4xf32>
    %c0_64 = arith.constant 0 : index
    %c0_65 = arith.constant 0 : index
    %146 = vector.load %arg14[%c0_64, %c0_65] : memref<1x4xf32, #tpu.memory_space<vmem>>, vector<1x4xf32>
    %147 = vector.broadcast %146 : vector<1x4xf32> to vector<2x4xf32>
    %148 = arith.addf %145, %147 : vector<2x4xf32>
    %cst_66 = arith.constant dense<0xFF800000> : vector<2xf32>
    %149 = vector.multi_reduction <maximumf>, %148, %cst_66 [1] : vector<2x4xf32> to vector<2xf32>
    %150 = vector.shape_cast %149 : vector<2xf32> to vector<2x1xf32>
    %151 = vector.broadcast %150 : vector<2x1xf32> to vector<2x4xf32>
    %152 = arith.subf %148, %151 : vector<2x4xf32>
    %153 = math.exp %152 : vector<2x4xf32>
    %cst_67 = arith.constant dense<0.000000e+00> : vector<2xf32>
    %154 = vector.multi_reduction <add>, %153, %cst_67 [1] : vector<2x4xf32> to vector<2xf32>
    %155 = vector.shape_cast %154 : vector<2xf32> to vector<2x1xf32>
    %156 = vector.broadcast %155 : vector<2x1xf32> to vector<2x4xf32>
    %157 = arith.divf %153, %156 : vector<2x4xf32>
    %c0_68 = arith.constant 0 : index
    %c0_69 = arith.constant 0 : index
    %158 = vector.load %arg16[%c0_68, %c0_69] : memref<2x4xf32, #tpu.memory_space<vmem>>, vector<2x4xf32>
    tpu.vector_store %arg16[%c0_68, %c0_69], %157 {strides = array<i32>} : memref<2x4xf32, #tpu.memory_space<vmem>>, vector<2x4xf32>,
    return
  }
}

</mosaic_0001>

<bundles_post_ra>
// kernel: hit_conv1d_forward.2
= control target key start
LH: loop header
LB: loop body
LE: loop exit
PB: predicated region body
PF: predicated region fallthrough
CT: control target
= control target key end

     0   :  { %vm195_vm0 = vcmask 1045504   ;;  %vm73_vm1 = vcmask 1046528   ;;  %s1359_s27 = smov 32   ;;  %s1360_s28 = smov 16   ;;  %vm317_vm2 = vcmask 1044480   ;;  %vm439_vm3 = vcmask 1043456   ;;  %s2212_s0 = inlined_call_operand.vmem [shape: f32[196,16], index: 0, kind: input, shape index: {}]   ;;  %s2213_s1 = inlined_call_operand.vmem [shape: f32[80,64], index: 1, kind: input, shape index: {}]   ;;  %s2214_s4 = inlined_call_operand.vmem [shape: f32[64,16], index: 4, kind: input, shape index: {}]   ;;  %s2215_s2 = inlined_call_operand.vmem [shape: f32[1,64], index: 2, kind: input, shape index: {}]   ;;  %s2216_s3 = inlined_call_operand.vmem [shape: s32[1,64], index: 3, kind: input, shape index: {}]   ;;  %s2217_s5 = inlined_call_operand.vmem [shape: f32[1,16], index: 5, kind: input, shape index: {}]   ;;  %s2218_s6 = inlined_call_operand.vmem [shape: f32[8,16], index: 6, kind: output, shape index: {}]  }
   0x1   :  { %v1403_v0 = vld [vmem:[%s2212_s0] sm:$0xff]  ;;  %v1408_v1 = vld [vmem:[%s2212_s0 + $0x8] sm:$0xff]  ;;  %v1413_v2 = vld [vmem:[%s2212_s0 + $0x10] sm:$0xff]  ;;  %s1361_s15 = smov 48   ;;  %s1362_s18 = smov 64   ;;  %vm561_vm4 = vcmask 130048  }
   0x2   :  { %v196_v3 = vrot.slane %v1403_v0, 2  ;;  %v197_v4 = vrot.slane %v1408_v1, 2  ;;  %v74_v5 = vrot.slane %v1403_v0, 1  ;;  %v75_v6 = vrot.slane %v1408_v1, 1  ;;  %v1435_v16 = vld [vmem:[%s2212_s0 + $0x18] sm:$0xff]  ;;  %v670_v17 = vld [vmem:[%s2213_s1 + $0x48] sm:$0xff] }
   0x3   :  { %v199_v7 = vrot.slane %v1413_v2, 2  ;;  %v77_v8 = vrot.slane %v1413_v2, 1  ;;  %v319_v11 = vrot.slane %v1408_v1, 3  ;;  %v321_v14 = vrot.slane %v1413_v2, 3  ;;  %v669_v19 = vld [vmem:[%s2213_s1 + $0x40] sm:$0xff]  ;;  %1258 = vmatprep.subr.mxu0 %v670_v17  ;;  %1333 = vmatprep.subr.mxu1 %v670_v17  ;;  %v668_v25 = vld [vmem:[%s2213_s1 + $0x38] sm:$0xff] }
   0x4   :  { %v198_v9 = vsel %vm195_vm0, %v196_v3, %v197_v4  ;;  %v76_v10 = vsel %vm73_vm1, %v74_v5, %v75_v6  ;;  %v318_v15 = vrot.slane %v1403_v0, 3  ;;  %v79_v18 = vrot.slane %v1435_v16, 1  ;;  %v1455_v24 = vld [vmem:[%s2212_s0 + $0x20] sm:$0xff]  ;;  %1259 = vmatpush3.msra.mxu0 %v670_v17  ;;  %1343 = vmatpush3.msra.mxu1 %v670_v17  ;;  %v667_v30 = vld [vmem:[%s2213_s1 + $0x30] sm:$0xff]  ;;  %v666_v31 = vld [vmem:[%s2213_s1 + $0x28] sm:$0xff] }
   0x5   :  { %245 = vrot.lane.b32.xlu1 %v198_v9, %s1359_s27  ;;  %123 = vrot.lane.b32.xlu0 %v76_v10, %s1360_s28  ;;  %v200_v12 = vsel %vm195_vm0, %v197_v4, %v199_v7  ;;  %v78_v13 = vsel %vm73_vm1, %v75_v6, %v77_v8  ;;  %v322_v20 = vsel %vm317_vm2, %v319_v11, %v321_v14  ;;  %v440_v22 = vrot.slane %v1403_v0, 4  ;;  %v665_v36 = vld [vmem:[%s2213_s1 + $0x20] sm:$0xff]  ;;  %v1494_v41 = vld [vmem:[%s2212_s0 + $0x28] sm:$0xff] }
   0x6   :  { %v320_v21 = vsel %vm317_vm2, %v318_v15, %v319_v11  ;;  %v441_v23 = vrot.slane %v1408_v1, 4  ;;  %1260 = vmatprep.subr.mxu0 %v669_v19  ;;  %1334 = vmatprep.subr.mxu1 %v669_v19  ;;  %v80_v26 = vsel %vm73_vm1, %v77_v8, %v79_v18  ;;  %v81_v28 = vrot.slane %v1455_v24, 1  ;;  %v664_v42 = vld [vmem:[%s2213_s1 + $0x18] sm:$0xff]  ;;  %v663_v43 = vld [vmem:[%s2213_s1 + $0x10] sm:$0xff]  ;;  %v662_v49 = vld [vmem:[%s2213_s1 + $0x8] sm:$0xff] }
   0x7   :  { %v443_v29 = vrot.slane %v1413_v2, 4  ;;  %1261 = vmatpush3.msra.mxu0 %v669_v19  ;;  %1344 = vmatpush3.msra.mxu1 %v669_v19  ;;  %v201_v34 = vrot.slane %v1435_v16, 2  ;;  %v203_v35 = vrot.slane %v1455_v24, 2  ;;  %v323_v39 = vrot.slane %v1435_v16, 3  ;;  %v1513_v48 = vld [vmem:[%s2212_s0 + $0x30] sm:$0xff]  ;;  %v661_v54 = vld [vmem:[%s2213_s1] sm:$0xff] }
   0x8   :  { %v442_v27 = vsel %vm439_vm3, %v440_v22, %v441_v23  ;;  %1262 = vmatprep.subr.mxu0 %v668_v25  ;;  %1335 = vmatprep.subr.mxu1 %v668_v25  ;;  %v82_v32 = vsel %vm73_vm1, %v79_v18, %v81_v28  ;;  %v325_v40 = vrot.slane %v1455_v24, 3  ;;  %v83_v46 = vrot.slane %v1494_v41, 1  ;;  %v1536_v59 = vld [vmem:[%s2212_s0 + $0x70] sm:$0xff]  ;;  %v1541_v60 = vld [vmem:[%s2212_s0 + $0x78] sm:$0xff]  ;;  %v1563_v9 = vld [vmem:[%s2212_s0 + $0x80] sm:$0xff] }
   0x9   :  { %247 = vrot.lane.b32.xlu1 %v200_v12, %s1359_s27  ;;  %125 = vrot.lane.b32.xlu0 %v78_v13, %s1360_s28  ;;  %v444_v33 = vsel %vm439_vm3, %v441_v23, %v443_v29  ;;  %v204_v37 = vsel %vm195_vm0, %v201_v34, %v203_v35  ;;  %v202_v38 = vsel %vm195_vm0, %v199_v7, %v201_v34  ;;  %v445_v47 = vrot.slane %v1435_v16, 4  ;;  %v1568_v10 = vld [vmem:[%s2212_s0 + $0x38] sm:$0xff] }
   0xa   :  { %1263 = vmatpush3.msra.mxu0 %v668_v25  ;;  %1345 = vmatpush3.msra.mxu1 %v668_v25  ;;  %v326_v44 = vsel %vm317_vm2, %v323_v39, %v325_v40  ;;  %v324_v45 = vsel %vm317_vm2, %v321_v14, %v323_v39  ;;  %v84_v50 = vsel %vm73_vm1, %v81_v28, %v83_v46  ;;  %v85_v52 = vrot.slane %v1513_v48, 1 }
   0xb   :  { %1264 = vmatprep.subr.mxu0 %v667_v30  ;;  %1336 = vmatprep.subr.mxu1 %v667_v30  ;;  %v446_v51 = vsel %vm439_vm3, %v443_v29, %v445_v47  ;;  %v447_v53 = vrot.slane %v1455_v24, 4  ;;  %v205_v57 = vrot.slane %v1494_v41, 2  ;;  %v207_v58 = vrot.slane %v1513_v48, 2 }
   0xc   :  { %1265 = vmatpush3.msra.mxu0 %v667_v30  ;;  %1346 = vmatpush3.msra.mxu1 %v667_v30  ;;  %v86_v55 = vsel %vm73_vm1, %v83_v46, %v85_v52  ;;  %v101_v61 = vrot.slane %v1536_v59, 1  ;;  %v103_v3 = vrot.slane %v1541_v60, 1  ;;  %v327_v4 = vrot.slane %v1494_v41, 3 }
   0xd   :  { %369 = vrot.lane.b32.xlu1 %v322_v20, %s1361_s15  ;;  %367 = vrot.lane.b32.xlu0 %v320_v21, %s1361_s15  ;;  %v448_v56 = vsel %vm439_vm3, %v445_v47, %v447_v53  ;;  %v208_v62 = vsel %vm195_vm0, %v205_v57, %v207_v58  ;;  %v206_v63 = vsel %vm195_vm0, %v203_v35, %v205_v57  ;;  %v449_v7 = vrot.slane %v1494_v41, 4  ;;  %v1586_v21 = vld [vmem:[%s2212_s0 + $0x40] sm:$0xff] }
   0xe   :  { %1266 = vmatprep.subr.mxu0 %v666_v31  ;;  %1337 = vmatprep.subr.mxu1 %v666_v31  ;;  %v104_v5 = vsel %vm73_vm1, %v101_v61, %v103_v3  ;;  %v328_v6 = vsel %vm317_vm2, %v325_v40, %v327_v4  ;;  %v329_v8 = vrot.slane %v1513_v48, 3  ;;  %v105_v13 = vrot.slane %v1563_v9, 1 }
   0xf   :  { %1267 = vmatpush3.msra.mxu0 %v666_v31  ;;  %1347 = vmatpush3.msra.mxu1 %v666_v31  ;;  %v450_v11 = vsel %vm439_vm3, %v447_v53, %v449_v7  ;;  %v87_v14 = vrot.slane %v1568_v10, 1  ;;  %v451_v15 = vrot.slane %v1513_v48, 4  ;;  %v223_v19 = vrot.slane %v1536_v59, 2  ;;  %v1645_v53 = vld [vmem:[%s2212_s0 + $0x48] sm:$0xff] }
  0x10   :  { %1268 = vmatprep.subr.mxu0 %v665_v36  ;;  %1338 = vmatprep.subr.mxu1 %v665_v36  ;;  %v330_v12 = vsel %vm317_vm2, %v327_v4, %v329_v8  ;;  %v106_v17 = vsel %vm73_vm1, %v103_v3, %v105_v13  ;;  %v225_v20 = vrot.slane %v1541_v60, 2  ;;  %v209_v25 = vrot.slane %v1568_v10, 2  ;;  %v1662_v4 = vld [vmem:[%s2212_s0 + $0x50] sm:$0xff] }
  0x11   :  { %127 = vrot.lane.b32.xlu1 %v80_v26, %s1360_s28  ;;  %489 = vrot.lane.b32.xlu0 %v442_v27, %s1362_s18  ;;  %v88_v18 = vsel %vm73_vm1, %v85_v52, %v87_v14  ;;  %v452_v22 = vsel %vm439_vm3, %v449_v7, %v451_v15  ;;  %v89_v26 = vrot.slane %v1586_v21, 1  ;;  %v345_v27 = vrot.slane %v1536_v59, 3  ;;  %v1640_v52 = vld [vmem:[%s2212_s0 + $0x90] sm:$0xff] }
  0x12   :  { %1269 = vmatpush3.msra.mxu0 %v665_v36  ;;  %1348 = vmatpush3.msra.mxu1 %v665_v36  ;;  %v226_v23 = vsel %vm195_vm0, %v223_v19, %v225_v20  ;;  %v210_v28 = vsel %vm195_vm0, %v207_v58, %v209_v25  ;;  %v347_v30 = vrot.slane %v1541_v60, 3  ;;  %v227_v31 = vrot.slane %v1563_v9, 2 }
  0x13   :  { %1270 = vmatprep.subr.mxu0 %v664_v42  ;;  %1339 = vmatprep.subr.mxu1 %v664_v42  ;;  %v90_v29 = vsel %vm73_vm1, %v87_v14, %v89_v26  ;;  %v331_v34 = vrot.slane %v1568_v10, 3  ;;  %v211_v35 = vrot.slane %v1586_v21, 2  ;;  %v467_v36 = vrot.slane %v1536_v59, 4 }
  0x14   :  { %1271 = vmatpush3.msra.mxu0 %v664_v42  ;;  %1349 = vmatpush3.msra.mxu1 %v664_v42  ;;  %v469_v39 = vrot.slane %v1541_v60, 4  ;;  %v349_v40 = vrot.slane %v1563_v9, 3  ;;  %v1621_v42 = vld [vmem:[%s2212_s0 + $0x88] sm:$0xff]  ;;  %v91_v57 = vrot.slane %v1645_v53, 1  ;;  %v213_v7 = vrot.slane %v1645_v53, 2 }
  0x15   :  { %129 = vrot.lane.b32.xlu1 %v82_v32, %s1360_s28  ;;  %491 = vrot.lane.b32.xlu0 %v444_v33, %s1362_s18  ;;  %v348_v32 = vsel %vm317_vm2, %v345_v27, %v347_v30  ;;  %v228_v33 = vsel %vm195_vm0, %v225_v20, %v227_v31  ;;  %v107_v46 = vrot.slane %v1621_v42, 1  ;;  %v229_v3 = vrot.slane %v1621_v42, 2 }
  0x16   :  { %1272 = vmatprep.subr.mxu0 %v663_v43  ;;  %1340 = vmatprep.subr.mxu1 %v663_v43  ;;  %v231_v14 = vrot.slane %v1640_v52, 2  ;;  %v215_v20 = vrot.slane %v1662_v4, 2  ;;  %vm586_vm5 = vcmask 261120   ;;  %vm611_vm6 = vcmask 392192  }
  0x17   :  { %1273 = vmatpush3.msra.mxu0 %v663_v43  ;;  %1350 = vmatpush3.msra.mxu1 %v663_v43  ;;  %v470_v43 = vsel %vm439_vm3, %v467_v36, %v469_v39  ;;  %vm636_vm7 = vcmask 523264   ;;  %vm678_vm8 = vcmask 654336   ;;  %vm1364_vm9 = vmmov 0  }
  0x18   :  { %1274 = vmatprep.subr.mxu0 %v662_v49  ;;  %1341 = vmatprep.subr.mxu1 %v662_v49  ;;  %vm1084_vm13 = vcmask 1040384   ;;  %vm1086_vm14 = vcmask 1041408   ;;  %vm1088_vm15 = vcmask 1042432  }
  0x19   :  { %251 = vrot.lane.b32.xlu1 %v204_v37, %s1359_s27  ;;  %249 = vrot.lane.b32.xlu0 %v202_v38, %s1359_s27  ;;  %v332_v37 = vsel %vm317_vm2, %v329_v8, %v331_v34  ;;  %v212_v38 = vsel %vm195_vm0, %v209_v25, %v211_v35  ;;  %v93_v8 = vrot.slane %v1662_v4, 1  ;;  %v473_v25 = vrot.slane %v1621_v42, 4 }
  0x1a   :  { %1275 = vmatpush3.msra.mxu0 %v662_v49  ;;  %1351 = vmatpush3.msra.mxu1 %v662_v49  ;;  %v108_v49 = vsel %vm73_vm1, %v105_v13, %v107_v46  ;;  %v351_v13 = vrot.slane %v1621_v42, 3 }
  0x1b   :  { %1276 = vmatprep.subr.mxu0 %v661_v54  ;;  %1342 = vmatprep.subr.mxu1 %v661_v54 }
  0x1c   :  { %1277 = vmatpush3.msra.mxu0 %v661_v54  ;;  %1352 = vmatpush3.msra.mxu1 %v661_v54 }
  0x1d   :  { %373 = vrot.lane.b32.xlu1 %v326_v44, %s1361_s15  ;;  %371 = vrot.lane.b32.xlu0 %v324_v45, %s1361_s15  ;;  %v350_v44 = vsel %vm317_vm2, %v347_v30, %v349_v40  ;;  %v333_v45 = vrot.slane %v1586_v21, 3 }
  0x1f   :  { %v334_v47 = vsel %vm317_vm2, %v331_v34, %v333_v45 }
  0x21   :  { %131 = vrot.lane.b32.xlu1 %v84_v50, %s1360_s28  ;;  %493 = vrot.lane.b32.xlu0 %v446_v51, %s1362_s18  ;;  %v471_v50 = vrot.slane %v1563_v9, 4  ;;  %v453_v51 = vrot.slane %v1568_v10, 4 }
  0x23   :  { %v472_v54 = vsel %vm439_vm3, %v469_v39, %v471_v50  ;;  %v1713_v39 = vld [vmem:[%s2212_s0 + $0x58] sm:$0xff] }
  0x25   :  { %133 = vrot.lane.b32.xlu1 %v86_v55, %s1360_s28  ;;  %495 = vrot.lane.b32.xlu0 %v448_v56, %s1362_s18  ;;  %v454_v55 = vsel %vm439_vm3, %v451_v15, %v453_v51  ;;  %v109_v56 = vrot.slane %v1640_v52, 1  ;;  %v352_v15 = vsel %vm317_vm2, %v349_v40, %v351_v13 }
  0x27   :  { %v110_v58 = vsel %vm73_vm1, %v107_v46, %v109_v56 }
  0x29   :  { %255 = vrot.lane.b32.xlu1 %v208_v62, %s1359_s27  ;;  %253 = vrot.lane.b32.xlu0 %v206_v63, %s1359_s27  ;;  %v92_v62 = vsel %vm73_vm1, %v89_v26, %v91_v57  ;;  %v455_v63 = vrot.slane %v1586_v21, 4  ;;  %v353_v26 = vrot.slane %v1640_v52, 3 }
  0x2b   :  { %v354_v30 = vsel %vm317_vm2, %v351_v13, %v353_v26  ;;  %v339_v13 = vrot.slane %v1713_v39, 3 }
  0x2d   :  { %151 = vrot.lane.b32.xlu1 %v104_v5, %s1360_s28  ;;  %375 = vrot.lane.b32.xlu0 %v328_v6, %s1361_s15  ;;  %v456_v5 = vsel %vm439_vm3, %v453_v51, %v455_v63  ;;  %v230_v6 = vsel %vm195_vm0, %v227_v31, %v229_v3  ;;  %v337_v31 = vrot.slane %v1662_v4, 3  ;;  %v1734_v51 = vld [vmem:[%s2212_s0 + $0x60] sm:$0xff] }
  0x31   :  { %497 = vrot.lane.b32.xlu1 %v450_v11, %s1362_s18  ;;  %377 = vrot.lane.b32.xlu0 %v330_v12, %s1361_s15  ;;  %v214_v11 = vsel %vm195_vm0, %v211_v35, %v213_v7  ;;  %v94_v12 = vsel %vm73_vm1, %v91_v57, %v93_v8  ;;  %v475_v35 = vrot.slane %v1640_v52, 4  ;;  %v97_v57 = vrot.slane %v1734_v51, 1 }
  0x33   :  { %v476_v40 = vsel %vm439_vm3, %v473_v25, %v475_v35 }
  0x35   :  { %153 = vrot.lane.b32.xlu1 %v106_v17, %s1360_s28  ;;  %135 = vrot.lane.b32.xlu0 %v88_v18, %s1360_s28  ;;  %v232_v17 = vsel %vm195_vm0, %v229_v3, %v231_v14  ;;  %v335_v18 = vrot.slane %v1645_v53, 3 }
  0x39   :  { %499 = vrot.lane.b32.xlu1 %v452_v22, %s1362_s18  ;;  %273 = vrot.lane.b32.xlu0 %v226_v23, %s1359_s27  ;;  %v336_v22 = vsel %vm317_vm2, %v333_v45, %v335_v18  ;;  %v216_v23 = vsel %vm195_vm0, %v213_v7, %v215_v20  ;;  %v95_v45 = vrot.slane %v1713_v39, 1 }
  0x3b   :  { %v98_v3 = vsel %vm73_vm1, %v95_v45, %v97_v57 }
  0x3d   :  { %257 = vrot.lane.b32.xlu1 %v210_v28, %s1359_s27  ;;  %137 = vrot.lane.b32.xlu0 %v90_v29, %s1360_s28  ;;  %v1691_v28 = vld [vmem:[%s2212_s0 + $0x98] sm:$0xff]  ;;  %v474_v29 = vsel %vm439_vm3, %v471_v50, %v473_v25 }
  0x3e   :  { %v233_v50 = vrot.slane %v1691_v28, 2 }
  0x41   :  { %395 = vrot.lane.b32.xlu1 %v348_v32, %s1361_s15  ;;  %275 = vrot.lane.b32.xlu0 %v228_v33, %s1359_s27  ;;  %v111_v32 = vrot.slane %v1691_v28, 1  ;;  %v338_v33 = vsel %vm317_vm2, %v335_v18, %v337_v31 }
  0x43   :  { %v112_v34 = vsel %vm73_vm1, %v109_v56, %v111_v32  ;;  %v217_v56 = vrot.slane %v1713_v39, 2 }
  0x45   :  { %379 = vrot.lane.b32.xlu1 %v332_v37, %s1361_s15  ;;  %259 = vrot.lane.b32.xlu0 %v212_v38, %s1359_s27  ;;  %v457_v37 = vrot.slane %v1645_v53, 4  ;;  %v1708_v38 = vld [vmem:[%s2212_s0 + $0xa0] sm:$0xff] }
  0x49   :  { %517 = vrot.lane.b32.xlu1 %v470_v43, %s1362_s18  ;;  %397 = vrot.lane.b32.xlu0 %v350_v44, %s1361_s15  ;;  %v458_v43 = vsel %vm439_vm3, %v455_v63, %v457_v37  ;;  %v113_v44 = vrot.slane %v1708_v38, 1  ;;  %v218_v63 = vsel %vm195_vm0, %v215_v20, %v217_v56  ;;  %v477_v20 = vrot.slane %v1691_v28, 4 }
  0x4b   :  { %v114_v46 = vsel %vm73_vm1, %v111_v32, %v113_v44 }
  0x4d   :  { %381 = vrot.lane.b32.xlu1 %v334_v47, %s1361_s15  ;;  %155 = vrot.lane.b32.xlu0 %v108_v49, %s1360_s28  ;;  %v96_v47 = vsel %vm73_vm1, %v93_v8, %v95_v45  ;;  %v459_v49 = vrot.slane %v1662_v4, 4 }
  0x51   :  { %519 = vrot.lane.b32.xlu1 %v472_v54, %s1362_s18  ;;  %501 = vrot.lane.b32.xlu0 %v454_v55, %s1362_s18  ;;  %v460_v54 = vsel %vm439_vm3, %v457_v37, %v459_v49  ;;  %v234_v55 = vsel %vm195_vm0, %v231_v14, %v233_v50  ;;  %v219_v14 = vrot.slane %v1734_v51, 2  ;;  %v478_v37 = vsel %vm439_vm3, %v475_v35, %v477_v20 }
  0x53   :  { %v220_v25 = vsel %vm195_vm0, %v217_v56, %v219_v14  ;;  %v461_v56 = vrot.slane %v1713_v39, 4 }
  0x55   :  { %157 = vrot.lane.b32.xlu1 %v110_v58, %s1360_s28  ;;  %139 = vrot.lane.b32.xlu0 %v92_v62, %s1360_s28 }
  0x59   :  { %503 = vrot.lane.b32.xlu1 %v456_v5, %s1362_s18  ;;  %277 = vrot.lane.b32.xlu0 %v230_v6, %s1359_s27  ;;  %v355_v5 = vrot.slane %v1691_v28, 3  ;;  %v235_v6 = vrot.slane %v1708_v38, 2 }
  0x5d   :  { %261 = vrot.lane.b32.xlu1 %v214_v11, %s1359_s27  ;;  %141 = vrot.lane.b32.xlu0 %v94_v12, %s1360_s28  ;;  %v356_v11 = vsel %vm317_vm2, %v353_v26, %v355_v5  ;;  %v236_v12 = vsel %vm195_vm0, %v233_v50, %v235_v6 }
  0x61   :  { %399 = vrot.lane.b32.xlu1 %v352_v15, %s1361_s15  ;;  %279 = vrot.lane.b32.xlu0 %v232_v17, %s1359_s27 }
  0x65   :  { %383 = vrot.lane.b32.xlu1 %v336_v22, %s1361_s15  ;;  %263 = vrot.lane.b32.xlu0 %v216_v23, %s1359_s27  ;;  %v340_v23 = vsel %vm317_vm2, %v337_v31, %v339_v13 }
  0x69   :  { %521 = vrot.lane.b32.xlu1 %v474_v29, %s1362_s18  ;;  %401 = vrot.lane.b32.xlu0 %v354_v30, %s1361_s15 }
  0x6d   :  { %385 = vrot.lane.b32.xlu1 %v338_v33, %s1361_s15  ;;  %159 = vrot.lane.b32.xlu0 %v112_v34, %s1360_s28  ;;  %v1777_v33 = vld [vmem:[%s2212_s0 + $0xa8] sm:$0xff]  ;;  %v341_v34 = vrot.slane %v1734_v51, 3 }
  0x6f   :  { %v342_v35 = vsel %vm317_vm2, %v339_v13, %v341_v34 }
  0x71   :  { %523 = vrot.lane.b32.xlu1 %v476_v40, %s1362_s18  ;;  %505 = vrot.lane.b32.xlu0 %v458_v43, %s1362_s18  ;;  %v115_v43 = vrot.slane %v1777_v33, 1 }
  0x75   :  { %161 = vrot.lane.b32.xlu1 %v114_v46, %s1360_s28  ;;  %143 = vrot.lane.b32.xlu0 %v96_v47, %s1360_s28 }
  0x77   :  { %v246_v58 = vpop.permute.xlu1 %245  ;;  %v124_v62 = vpop.permute.xlu0 %123 }
  0x78   :  { %v562_v15 = vsel %vm561_vm4, %v1403_v0, %v124_v62  ;;  %v357_v0 = vrot.slane %v1708_v38, 3 }
  0x79   :  { %507 = vrot.lane.b32.xlu1 %v460_v54, %s1362_s18  ;;  %281 = vrot.lane.b32.xlu0 %v234_v55, %s1359_s27  ;;  %v587_v22 = vsel %vm586_vm5, %v562_v15, %v246_v58  ;;  %v116_v54 = vsel %vm73_vm1, %v113_v44, %v115_v43  ;;  %v479_v55 = vrot.slane %v1708_v38, 4  ;;  %v463_v15 = vrot.slane %v1734_v51, 4 }
  0x7a   :  { %v358_v40 = vsel %vm317_vm2, %v355_v5, %v357_v0  ;;  %v462_v5 = vsel %vm439_vm3, %v459_v49, %v461_v56 }
  0x7b   :  { %v248_v7 = vpop.permute.xlu1 %247  ;;  %v126_v8 = vpop.permute.xlu0 %125  ;;  %v480_v44 = vsel %vm439_vm3, %v477_v20, %v479_v55  ;;  %v237_v20 = vrot.slane %v1777_v33, 2 }
  0x7c   :  { %v563_v26 = vsel %vm561_vm4, %v1408_v1, %v126_v8 }
  0x7d   :  { %265 = vrot.lane.b32.xlu1 %v218_v63, %s1359_s27  ;;  %145 = vrot.lane.b32.xlu0 %v98_v3, %s1360_s28  ;;  %v588_v1 = vsel %vm586_vm5, %v563_v26, %v248_v7  ;;  %v1808_v63 = vld [vmem:[%s2212_s0 + $0xb0] sm:$0xff]  ;;  %v1813_v3 = vld [vmem:[%s2212_s0 + $0x68] sm:$0xff] }
  0x7e   :  { %v117_v7 = vrot.slane %v1808_v63, 1  ;;  %v99_v8 = vrot.slane %v1813_v3, 1 }
  0x7f   :  { %v370_v17 = vpop.permute.xlu1 %369  ;;  %v368_v18 = vpop.permute.xlu0 %367 }
  0x80   :  { %v612_v29 = vsel %vm611_vm6, %v587_v22, %v368_v18  ;;  %v613_v45 = vsel %vm611_vm6, %v588_v1, %v370_v17  ;;  %v118_v49 = vsel %vm73_vm1, %v115_v43, %v117_v7  ;;  %v100_v18 = vsel %vm73_vm1, %v97_v57, %v99_v8 }
  0x81   :  { %403 = vrot.lane.b32.xlu1 %v356_v11, %s1361_s15  ;;  %283 = vrot.lane.b32.xlu0 %v236_v12, %s1359_s27  ;;  %v464_v57 = vsel %vm439_vm3, %v461_v56, %v463_v15  ;;  %v359_v43 = vrot.slane %v1777_v33, 3 }
  0x83   :  { %v128_v30 = vpop.permute.xlu1 %127  ;;  %v490_v32 = vpop.permute.xlu0 %489 }
  0x84   :  { %v637_v31 = vsel %vm636_vm7, %v612_v29, %v490_v32  ;;  %v564_v13 = vsel %vm561_vm4, %v1413_v2, %v128_v30  ;;  %v238_v30 = vsel %vm195_vm0, %v235_v6, %v237_v20  ;;  %v221_v32 = vrot.slane %v1813_v3, 2 }
  0x85   :  { %387 = vrot.lane.b32.xlu1 %v340_v23, %s1361_s15  ;;  %267 = vrot.lane.b32.xlu0 %v220_v25, %s1359_s27  ;;  %v102_v6 = vsel %vm73_vm1, %v99_v8, %v101_v61 }
  0x86   :  { %1278 = vmatprep.mubr.msk.f32.mxu0 %vm678_vm8, %v637_v31 }
  0x87   :  { %v130_v46 = vpop.permute.xlu1 %129  ;;  %v492_v47 = vpop.permute.xlu0 %491 }
  0x88   :  { %v638_v50 = vsel %vm636_vm7, %v613_v45, %v492_v47  ;;  %v565_v26 = vsel %vm561_vm4, %v1435_v16, %v130_v46  ;;  %v239_v45 = vrot.slane %v1808_v63, 2 }
  0x89   :  { %525 = vrot.lane.b32.xlu1 %v478_v37, %s1362_s18  ;;  %405 = vrot.lane.b32.xlu0 %v358_v40, %s1361_s15  ;;  %v222_v40 = vsel %vm195_vm0, %v219_v14, %v221_v32 }
  0x8a   :  { %1279 = vmatmul.mubr.msk.f32.vlgmr.msra.gmra.mxu0 %vm678_vm8, %v638_v50  ;;  %v360_v50 = vsel %vm317_vm2, %v357_v0, %v359_v43  ;;  %v240_v14 = vsel %vm195_vm0, %v237_v20, %v239_v45 }
  0x8b   :  { %v252_v58 = vpop.permute.xlu1 %251  ;;  %v250_v62 = vpop.permute.xlu0 %249 }
  0x8c   :  { %v589_v17 = vsel %vm586_vm5, %v564_v13, %v250_v62  ;;  %v590_v29 = vsel %vm586_vm5, %v565_v26, %v252_v58  ;;  %v224_v58 = vsel %vm195_vm0, %v221_v32, %v223_v19 }
  0x8d   :  { %389 = vrot.lane.b32.xlu1 %v342_v35, %s1361_s15  ;;  %163 = vrot.lane.b32.xlu0 %v116_v54, %s1360_s28  ;;  %v343_v35 = vrot.slane %v1813_v3, 3 }
  0x8f   :  { %v374_v11 = vpop.permute.xlu1 %373  ;;  %v372_v12 = vpop.permute.xlu0 %371  ;;  %v344_v0 = vsel %vm317_vm2, %v341_v34, %v343_v35 }
  0x90   :  { %v614_v2 = vsel %vm611_vm6, %v589_v17, %v372_v12  ;;  %v615_v16 = vsel %vm611_vm6, %v590_v29, %v374_v11  ;;  %v1890_v12 = vld [vmem:[%s2212_s0 + $0xb8] sm:$0xff] }
  0x91   :  { %527 = vrot.lane.b32.xlu1 %v480_v44, %s1362_s18  ;;  %509 = vrot.lane.b32.xlu0 %v462_v5, %s1362_s18  ;;  %v481_v44 = vrot.slane %v1777_v33, 4  ;;  %v361_v5 = vrot.slane %v1808_v63, 3  ;;  %v119_v17 = vrot.slane %v1890_v12, 1  ;;  %v241_v32 = vrot.slane %v1890_v12, 2 }
  0x93   :  { %v132_v22 = vpop.permute.xlu1 %131  ;;  %v494_v23 = vpop.permute.xlu0 %493  ;;  %v482_v34 = vsel %vm439_vm3, %v479_v55, %v481_v44  ;;  %v362_v13 = vsel %vm317_vm2, %v359_v43, %v361_v5  ;;  %v120_v55 = vsel %vm73_vm1, %v117_v7, %v119_v17 }
  0x94   :  { %v639_v25 = vsel %vm636_vm7, %v614_v2, %v494_v23  ;;  %v566_v56 = vsel %vm561_vm4, %v1455_v24, %v132_v22  ;;  %v346_v2 = vsel %vm317_vm2, %v343_v35, %v345_v27  ;;  %v483_v23 = vrot.slane %v1808_v63, 4 }
  0x95   :  { %165 = vrot.lane.b32.xlu1 %v118_v49, %s1360_s28  ;;  %147 = vrot.lane.b32.xlu0 %v100_v18, %s1360_s28 }
  0x96   :  { %1281 = vmatprep.mubr.msk.f32.mxu0 %vm678_vm8, %v639_v25  ;;  %v465_v25 = vrot.slane %v1813_v3, 4  ;;  %v484_v7 = vsel %vm439_vm3, %v481_v44, %v483_v23 }
  0x97   :  { %v134_v31 = vpop.permute.xlu1 %133  ;;  %v496_v1 = vpop.permute.xlu0 %495 }
  0x98   :  { %v640_v37 = vsel %vm636_vm7, %v615_v16, %v496_v1  ;;  %v567_v20 = vsel %vm561_vm4, %v1494_v41, %v134_v31 }
  0x99   :  { %511 = vrot.lane.b32.xlu1 %v464_v57, %s1362_s18  ;;  %285 = vrot.lane.b32.xlu0 %v238_v30, %s1359_s27  ;;  %v47_v57 = vld [vmem:[%s2212_s0 + $0xc0] sm:$0xf]  ;;  %v466_v30 = vsel %vm439_vm3, %v463_v15, %v465_v25  ;;  %v363_v15 = vrot.slane %v1890_v12, 3 }
  0x9a   :  { %1282 = vmatmul.mubr.msk.f32.gmra.mxu0 %vm678_vm8, %v640_v37  ;;  %v121_v16 = vrot.slane %v47_v57, 1  ;;  %v242_v37 = vsel %vm195_vm0, %v239_v45, %v241_v32  ;;  %v487_v44 = vrot.slane %v47_v57, 4 }
  0x9b   :  { %v256_v46 = vpop.permute.xlu1 %255  ;;  %v254_v47 = vpop.permute.xlu0 %253 }
  0x9c   :  { %v591_v62 = vsel %vm586_vm5, %v566_v56, %v254_v47  ;;  %v592_v22 = vsel %vm586_vm5, %v567_v20, %v256_v46  ;;  %v365_v47 = vrot.slane %v47_v57, 3 }
  0x9d   :  { %269 = vrot.lane.b32.xlu1 %v222_v40, %s1359_s27  ;;  %149 = vrot.lane.b32.xlu0 %v102_v6, %s1360_s28  ;;  %v122_v40 = vsel %vm73_vm1, %v119_v17, %v121_v16  ;;  %v243_v6 = vrot.slane %v47_v57, 2 }
  0x9e   :  { %v366_v56 = vsel %vm317_vm2, %v363_v15, %v365_v47 }
  0x9f   :  { %v152_v54 = vpop.permute.xlu1 %151  ;;  %v376_v61 = vpop.permute.xlu0 %375 }
  0xa0   :  { %v616_v24 = vsel %vm611_vm6, %v591_v62, %v376_v61  ;;  %v576_v61 = vsel %vm561_vm4, %v1536_v59, %v152_v54  ;;  %v364_v62 = vsel %vm317_vm2, %v361_v5, %v363_v15 }
  0xa1   :  { %407 = vrot.lane.b32.xlu1 %v360_v50, %s1361_s15  ;;  %287 = vrot.lane.b32.xlu0 %v240_v14, %s1359_s27  ;;  %v244_v50 = vsel %vm195_vm0, %v241_v32, %v243_v6  ;;  %v468_v14 = vsel %vm439_vm3, %v465_v25, %v467_v36 }
  0xa3   :  { %v498_v8 = vpop.permute.xlu1 %497  ;;  %v378_v11 = vpop.permute.xlu0 %377 }
  0xa4   :  { %v641_v19 = vsel %vm636_vm7, %v616_v24, %v498_v8  ;;  %v617_v41 = vsel %vm611_vm6, %v592_v22, %v378_v11 }
  0xa5   :  { %391 = vrot.lane.b32.xlu1 %v344_v0, %s1361_s15  ;;  %271 = vrot.lane.b32.xlu0 %v224_v58, %s1359_s27  ;;  %v485_v0 = vrot.slane %v1890_v12, 4 }
  0xa6   :  { %1284 = vmatprep.mubr.msk.f32.mxu0 %vm678_vm8, %v641_v19 }
  0xa7   :  { %v154_v49 = vpop.permute.xlu1 %153  ;;  %v136_v18 = vpop.permute.xlu0 %135  ;;  %v488_v59 = vsel %vm439_vm3, %v485_v0, %v487_v44  ;;  %v486_v54 = vsel %vm439_vm3, %v483_v23, %v485_v0 }
  0xa9   :  { %529 = vrot.lane.b32.xlu1 %v482_v34, %s1362_s18  ;;  %409 = vrot.lane.b32.xlu0 %v362_v13, %s1361_s15  ;;  %v577_v34 = vsel %vm561_vm4, %v1541_v60, %v154_v49  ;;  %v568_v13 = vsel %vm561_vm4, %v1513_v48, %v136_v18 }
  0xab   :  { %v500_v26 = vpop.permute.xlu1 %499  ;;  %v274_v29 = vpop.permute.xlu0 %273 }
  0xac   :  { %v642_v27 = vsel %vm636_vm7, %v617_v41, %v500_v26  ;;  %v601_v58 = vsel %vm586_vm5, %v576_v61, %v274_v29 }
  0xad   :  { %393 = vrot.lane.b32.xlu1 %v346_v2, %s1361_s15  ;;  %167 = vrot.lane.b32.xlu0 %v120_v55, %s1360_s28 }
  0xae   :  { %1285 = vmatmul.mubr.msk.f32.gmra.mxu0 %vm678_vm8, %v642_v27 }
  0xaf   :  { %v258_v31 = vpop.permute.xlu1 %257  ;;  %v138_v1 = vpop.permute.xlu0 %137 }
  0xb0   :  { %v593_v17 = vsel %vm586_vm5, %v568_v13, %v258_v31  ;;  %v569_v18 = vsel %vm561_vm4, %v1568_v10, %v138_v1 }
  0xb1   :  { %531 = vrot.lane.b32.xlu1 %v484_v7, %s1362_s18  ;;  %513 = vrot.lane.b32.xlu0 %v466_v30, %s1362_s18 }
  0xb3   :  { %v396_v43 = vpop.permute.xlu1 %395  ;;  %v276_v46 = vpop.permute.xlu0 %275 }
  0xb4   :  { %v626_v36 = vsel %vm611_vm6, %v601_v58, %v396_v43  ;;  %v602_v20 = vsel %vm586_vm5, %v577_v34, %v276_v46 }
  0xb5   :  { %289 = vrot.lane.b32.xlu1 %v242_v37, %s1359_s27  ;;  %169 = vrot.lane.b32.xlu0 %v122_v40, %s1360_s28 }
  0xb7   :  { %v380_v35 = vpop.permute.xlu1 %379  ;;  %v260_v45 = vpop.permute.xlu0 %259 }
  0xb8   :  { %v618_v2 = vsel %vm611_vm6, %v593_v17, %v380_v35  ;;  %v594_v41 = vsel %vm586_vm5, %v569_v18, %v260_v45 }
  0xb9   :  { %291 = vrot.lane.b32.xlu1 %v244_v50, %s1359_s27  ;;  %515 = vrot.lane.b32.xlu0 %v468_v14, %s1362_s18 }
  0xbb   :  { %v518_v24 = vpop.permute.xlu1 %517  ;;  %v398_v8 = vpop.permute.xlu0 %397 }
  0xbc   :  { %v651_v11 = vsel %vm636_vm7, %v626_v36, %v518_v24  ;;  %v627_v22 = vsel %vm611_vm6, %v602_v20, %v398_v8 }
  0xbd   :  { %413 = vrot.lane.b32.xlu1 %v366_v56, %s1361_s15  ;;  %411 = vrot.lane.b32.xlu0 %v364_v62, %s1361_s15 }
  0xbe   :  { %1299 = vmatprep.mubr.msk.f32.mxu1 %vm678_vm8, %v651_v11 }
  0xbf   :  { %v382_v5 = vpop.permute.xlu1 %381  ;;  %v156_v19 = vpop.permute.xlu0 %155 }
  0xc0   :  { %v619_v26 = vsel %vm611_vm6, %v594_v41, %v382_v5  ;;  %v578_v40 = vsel %vm561_vm4, %v1563_v9, %v156_v19 }
  0xc1   :  { %535 = vrot.lane.b32.xlu1 %v488_v59, %s1362_s18  ;;  %533 = vrot.lane.b32.xlu0 %v486_v54, %s1362_s18 }
  0xc3   :  { %v520_v55 = vpop.permute.xlu1 %519  ;;  %v502_v23 = vpop.permute.xlu0 %501 }
  0xc4   :  { %v652_v25 = vsel %vm636_vm7, %v627_v22, %v520_v55  ;;  %v643_v60 = vsel %vm636_vm7, %v618_v2, %v502_v23 }
  0xc5   :  { %1287 = vmatprep.mubr.msk.f32.mxu0 %vm678_vm8, %v643_v60  ;;  %1300 = vmatmul.mubr.msk.f32.vlgmr.msra.gmra.mxu1 %vm678_vm8, %v652_v25 }
  0xc7   :  { %v158_v48 = vpop.permute.xlu1 %157  ;;  %v140_v49 = vpop.permute.xlu0 %139 }
  0xc8   :  { %v579_v50 = vsel %vm561_vm4, %v1621_v42, %v158_v48  ;;  %v570_v14 = vsel %vm561_vm4, %v1586_v21, %v140_v49 }
  0xcb   :  { %v504_v29 = vpop.permute.xlu1 %503  ;;  %v278_v57 = vpop.permute.xlu0 %277 }
  0xcc   :  { %v644_v27 = vsel %vm636_vm7, %v619_v26, %v504_v29  ;;  %v603_v10 = vsel %vm586_vm5, %v578_v40, %v278_v57 }
  0xcd   :  { %1288 = vmatmul.mubr.msk.f32.gmra.mxu0 %vm678_vm8, %v644_v27 }
  0xcf   :  { %v262_v7 = vpop.permute.xlu1 %261  ;;  %v142_v30 = vpop.permute.xlu0 %141 }
  0xd0   :  { %v595_v9 = vsel %vm586_vm5, %v570_v14, %v262_v7  ;;  %v571_v44 = vsel %vm561_vm4, %v1645_v53, %v142_v30 }
  0xd3   :  { %v400_v32 = vpop.permute.xlu1 %399  ;;  %v280_v16 = vpop.permute.xlu0 %279 }
  0xd4   :  { %v628_v1 = vsel %vm611_vm6, %v603_v10, %v400_v32  ;;  %v604_v35 = vsel %vm586_vm5, %v579_v50, %v280_v16 }
  0xd7   :  { %v384_v31 = vpop.permute.xlu1 %383  ;;  %v264_v37 = vpop.permute.xlu0 %263 }
  0xd8   :  { %v620_v45 = vsel %vm611_vm6, %v595_v9, %v384_v31  ;;  %v596_v36 = vsel %vm586_vm5, %v571_v44, %v264_v37 }
  0xdb   :  { %v522_v6 = vpop.permute.xlu1 %521  ;;  %v402_v43 = vpop.permute.xlu0 %401 }
  0xdc   :  { %v653_v46 = vsel %vm636_vm7, %v628_v1, %v522_v6  ;;  %v629_v61 = vsel %vm611_vm6, %v604_v35, %v402_v43 }
  0xdd   :  { %1302 = vmatprep.mubr.msk.f32.mxu1 %vm678_vm8, %v653_v46 }
  0xdf   :  { %v386_v15 = vpop.permute.xlu1 %385  ;;  %v160_v47 = vpop.permute.xlu0 %159 }
  0xe0   :  { %v621_v24 = vsel %vm611_vm6, %v596_v36, %v386_v15  ;;  %v580_v20 = vsel %vm561_vm4, %v1640_v52, %v160_v47 }
  0xe3   :  { %v524_v56 = vpop.permute.xlu1 %523  ;;  %v506_v58 = vpop.permute.xlu0 %505 }
  0xe4   :  { %v654_v62 = vsel %vm636_vm7, %v629_v61, %v524_v56  ;;  %v645_v0 = vsel %vm636_vm7, %v620_v45, %v506_v58 }
  0xe5   :  { %1290 = vmatprep.mubr.msk.f32.mxu0 %vm678_vm8, %v645_v0  ;;  %1303 = vmatmul.mubr.msk.f32.gmra.mxu1 %vm678_vm8, %v654_v62 }
  0xe7   :  { %v162_v42 = vpop.permute.xlu1 %161  ;;  %v144_v21 = vpop.permute.xlu0 %143 }
  0xe8   :  { %v581_v48 = vsel %vm561_vm4, %v1691_v28, %v162_v42  ;;  %v572_v49 = vsel %vm561_vm4, %v1662_v4, %v144_v21 }
  0xeb   :  { %v508_v8 = vpop.permute.xlu1 %507  ;;  %v282_v11 = vpop.permute.xlu0 %281 }
  0xec   :  { %v646_v59 = vsel %vm636_vm7, %v621_v24, %v508_v8  ;;  %v605_v53 = vsel %vm586_vm5, %v580_v20, %v282_v11 }
  0xed   :  { %1291 = vmatmul.mubr.msk.f32.gmra.mxu0 %vm678_vm8, %v646_v59 }
  0xef   :  { %v266_v54 = vpop.permute.xlu1 %265  ;;  %v146_v5 = vpop.permute.xlu0 %145 }
  0xf0   :  { %v597_v52 = vsel %vm586_vm5, %v572_v49, %v266_v54  ;;  %v573_v30 = vsel %vm561_vm4, %v1713_v39, %v146_v5  ;;  %v1099_v49 = vld [vmem:[%s2214_s4 + $0x28] sm:$0xff] }
  0xf3   :  { %v404_v19 = vpop.permute.xlu1 %403  ;;  %v284_v34 = vpop.permute.xlu0 %283 }
  0xf4   :  { %v630_v2 = vsel %vm611_vm6, %v605_v53, %v404_v19  ;;  %v606_v18 = vsel %vm586_vm5, %v581_v48, %v284_v34  ;;  %v1100_v48 = vld [vmem:[%s2214_s4 + $0x30] sm:$0xff] }
  0xf7   :  { %v388_v13 = vpop.permute.xlu1 %387  ;;  %v268_v17 = vpop.permute.xlu0 %267 }
  0xf8   :  { %v622_v41 = vsel %vm611_vm6, %v597_v52, %v388_v13  ;;  %v598_v32 = vsel %vm586_vm5, %v573_v30, %v268_v17  ;;  %v1098_v52 = vld [vmem:[%s2214_s4 + $0x20] sm:$0xff] }
  0xfb   :  { %v526_v22 = vpop.permute.xlu1 %525  ;;  %v406_v55 = vpop.permute.xlu0 %405 }
  0xfc   :  { %v655_v23 = vsel %vm636_vm7, %v630_v2, %v526_v22  ;;  %v631_v26 = vsel %vm611_vm6, %v606_v18, %v406_v55  ;;  %v1097_v18 = vld [vmem:[%s2214_s4 + $0x18] sm:$0xff] }
  0xfd   :  { %1305 = vmatprep.mubr.msk.f32.mxu1 %vm678_vm8, %v655_v23 }
  0xff   :  { %v390_v25 = vpop.permute.xlu1 %389  ;;  %v164_v60 = vpop.permute.xlu0 %163 }
 0x100   :  { %v623_v16 = vsel %vm611_vm6, %v598_v32, %v390_v25  ;;  %v582_v47 = vsel %vm561_vm4, %v1708_v38, %v164_v60 }
 0x103   :  { %v528_v29 = vpop.permute.xlu1 %527  ;;  %v510_v57 = vpop.permute.xlu0 %509 }
 0x104   :  { %v656_v27 = vsel %vm636_vm7, %v631_v26, %v528_v29  ;;  %v647_v7 = vsel %vm636_vm7, %v622_v41, %v510_v57  ;;  %v1096_v41 = vld [vmem:[%s2214_s4 + $0x10] sm:$0xff]  ;;  %v1095_v26 = vld [vmem:[%s2214_s4 + $0x8] sm:$0xff]  ;;  %v1094_v29 = vld [vmem:[%s2214_s4] sm:$0xff] }
 0x105   :  { %1293 = vmatprep.mubr.msk.f32.mxu0 %vm678_vm8, %v647_v7  ;;  %1306 = vmatmul.mubr.msk.f32.gmra.mxu1 %vm678_vm8, %v656_v27 }
 0x107   :  { %v166_v28 = vpop.permute.xlu1 %165  ;;  %v148_v4 = vpop.permute.xlu0 %147 }
 0x108   :  { %v583_v56 = vsel %vm561_vm4, %v1777_v33, %v166_v28  ;;  %v574_v58 = vsel %vm561_vm4, %v1734_v51, %v148_v4 }
 0x10b   :  { %v512_v31 = vpop.permute.xlu1 %511  ;;  %v286_v37 = vpop.permute.xlu0 %285 }
 0x10c   :  { %v648_v40 = vsel %vm636_vm7, %v623_v16, %v512_v31  ;;  %v607_v39 = vsel %vm586_vm5, %v582_v47, %v286_v37  ;;  %v960_v37 = vlaneseq }
 0x10d   :  { %1294 = vmatmul.mubr.msk.f32.gmra.mxu0 %vm678_vm8, %v648_v40 }
 0x10f   :  { %v270_v10 = vpop.permute.xlu1 %269  ;;  %v150_v1 = vpop.permute.xlu0 %149 }
 0x110   :  { %v599_v38 = vsel %vm586_vm5, %v574_v58, %v270_v10  ;;  %v575_v8 = vsel %vm561_vm4, %v1813_v3, %v150_v1  ;;  %v2084_v1 = vld [vmem:[%s2215_s2] ss:$0 sm:$0xff] }
 0x113   :  { %v408_v6 = vpop.permute.xlu1 %407  ;;  %v288_v43 = vpop.permute.xlu0 %287 }
 0x114   :  { %v632_v50 = vsel %vm611_vm6, %v607_v39, %v408_v6  ;;  %v608_v62 = vsel %vm586_vm5, %v583_v56, %v288_v43  ;;  %v961_v6 = vshrl.u32 %v960_v37, 7 }
 0x116   :  { %v962_v39 = vadd.s32 8, %v961_v6 }
 0x117   :  { %v392_v46 = vpop.permute.xlu1 %391  ;;  %v272_v15 = vpop.permute.xlu0 %271 }
 0x118   :  { %v624_v0 = vsel %vm611_vm6, %v599_v38, %v392_v46  ;;  %v600_v11 = vsel %vm586_vm5, %v575_v8, %v272_v15 }
 0x11b   :  { %v530_v14 = vpop.permute.xlu1 %529  ;;  %v410_v9 = vpop.permute.xlu0 %409 }
 0x11c   :  { %v657_v35 = vsel %vm636_vm7, %v632_v50, %v530_v14  ;;  %v633_v42 = vsel %vm611_vm6, %v608_v62, %v410_v9  ;;  %v1212_v9 = vld [vmem:[%s2216_s3] ss:$0 sm:$0xff]  ;;  %v963_v62 = vadd.s32 16, %v961_v6 }
 0x11d   :  { %1308 = vmatprep.mubr.msk.f32.mxu1 %vm678_vm8, %v657_v35  ;;  %vm2095_vm10 = vcmp.lt.s32.totalorder %v961_v6, %v1212_v9  ;;  %vm2101_vm11 = vcmp.lt.s32.totalorder %v962_v39, %v1212_v9 }
 0x11e   :  { %vm2114_vm12 = vcmp.lt.s32.totalorder %v963_v62, %v1212_v9 }
 0x11f   :  { %v394_v45 = vpop.permute.xlu1 %393  ;;  %v168_v61 = vpop.permute.xlu0 %167 }
 0x120   :  { %v625_v59 = vsel %vm611_vm6, %v600_v11, %v394_v45  ;;  %v584_v17 = vsel %vm561_vm4, %v1808_v63, %v168_v61  ;;  %v1363_v63 = vmov 0.0  }
 0x121   :  { %1314 = vmatprep.subr.mxu1 %v1363_v63 }
 0x123   :  { %v532_v21 = vpop.permute.xlu1 %531  ;;  %v514_v44 = vpop.permute.xlu0 %513 }
 0x124   :  { %v658_v36 = vsel %vm636_vm7, %v633_v42, %v532_v21  ;;  %v649_v24 = vsel %vm636_vm7, %v624_v0, %v514_v44 }
 0x125   :  { %1296 = vmatprep.mubr.msk.f32.mxu0 %vm678_vm8, %v649_v24  ;;  %1309 = vmatmul.mubr.msk.f32.gmra.mxu1 %vm678_vm8, %v658_v36 }
 0x127   :  { %v290_v33 = vpop.permute.xlu1 %289  ;;  %v170_v51 = vpop.permute.xlu0 %169 }
 0x128   :  { %v585_v20 = vsel %vm561_vm4, %v1890_v12, %v170_v51  ;;  %v609_v3 = vsel %vm586_vm5, %v584_v17, %v290_v33  ;;  %v1101_v12 = vld [vmem:[%s2214_s4 + $0x38] sm:$0xff] }
 0x129   :  { %1315 = vmatpush3.msra.mxu1 %v1101_v12 }
 0x12a   :  { %1316 = vmatprep.subr.mxu1 %v1363_v63 }
 0x12b   :  { %v292_v54 = vpop.permute.xlu1 %291  ;;  %v516_v5 = vpop.permute.xlu0 %515  ;;  %1317 = vmatpush3.msra.mxu1 %v1100_v48 }
 0x12c   :  { %v650_v19 = vsel %vm636_vm7, %v625_v59, %v516_v5  ;;  %v610_v53 = vsel %vm586_vm5, %v585_v20, %v292_v54  ;;  %1318 = vmatprep.subr.mxu1 %v1363_v63 }
 0x12d   :  { %1297 = vmatmul.mubr.msk.f32.gmra.mxu0 %vm678_vm8, %v650_v19  ;;  %1319 = vmatpush3.msra.mxu1 %v1099_v49 }
 0x12e   :  { %1320 = vmatprep.subr.mxu1 %v1363_v63 }
 0x12f   :  { %v414_v34 = vpop.permute.xlu1 %413  ;;  %v412_v13 = vpop.permute.xlu0 %411  ;;  %1321 = vmatpush3.msra.mxu1 %v1098_v52 }
 0x130   :  { %v635_v2 = vsel %vm611_vm6, %v610_v53, %v414_v34  ;;  %v634_v22 = vsel %vm611_vm6, %v609_v3, %v412_v13  ;;  %1322 = vmatprep.subr.mxu1 %v1363_v63 }
 0x131   :  { %1323 = vmatpush3.msra.mxu1 %v1097_v18 }
 0x132   :  { %1324 = vmatprep.subr.mxu1 %v1363_v63 }
 0x133   :  { %v536_v55 = vpop.permute.xlu1 %535  ;;  %v534_v23 = vpop.permute.xlu0 %533  ;;  %1325 = vmatpush3.msra.mxu1 %v1096_v41 }
 0x134   :  { %v660_v25 = vsel %vm636_vm7, %v635_v2, %v536_v55  ;;  %v659_v60 = vsel %vm636_vm7, %v634_v22, %v534_v23  ;;  %1326 = vmatprep.subr.mxu1 %v1363_v63 }
 0x135   :  { %1311 = vmatprep.mubr.msk.f32.mxu1 %vm678_vm8, %v659_v60  ;;  %1327 = vmatpush3.msra.mxu1 %v1095_v26 }
 0x136   :  { %1312 = vmatmul.mubr.msk.f32.gmra.mxu1 %vm678_vm8, %v660_v25  ;;  %1328 = vmatprep.subr.mxu1 %v1363_v63 }
 0x137   :  { %1330 = vmatprep.mubr.msk.f32.mxu1 %vm1364_vm9, %v1363_v63  ;;  %1329 = vmatpush3.msra.mxu1 %v1094_v29 }
 0x14a   :  { %v1280_v57 = vpop.f32.mrf.mxu0 }
 0x14b   :  { %v823_v15 = vadd.f32 %v1280_v57, %v2084_v1 }
 0x14c   :  { %v817_v27 = vpop.f32.mrf.mxu0 }
 0x14d   :  { %v818_v46 = vadd.f32 %v2084_v1, %v817_v27  ;;  %v937_v38 = vmax.f32 %v823_v15, 0.0 }
 0x14f   :  { %v936_v35 = vmax.f32 %v818_v46, 0.0  ;;  %v973_v5 = vsel %vm2101_vm11, %v937_v38, 0.0 }
 0x150   :  { %v976_v25 = vsel %vm636_vm7, %v973_v5, -inf }
 0x151   :  { %v972_v36 = vsel %vm2095_vm10, %v936_v35, 0.0 }
 0x152   :  { %v975_v17 = vsel %vm636_vm7, %v972_v36, -inf }
 0x153   :  { %v978_v48 = vmax.f32 %v975_v17, %v976_v25 }
 0x15a   :  { %v1283_v7 = vpop.f32.mrf.mxu0 }
 0x15b   :  { %v833_v50 = vadd.f32 %v1283_v7, %v2084_v1 }
 0x15c   :  { %v827_v28 = vpop.f32.mrf.mxu0 }
 0x15d   :  { %v828_v58 = vadd.f32 %v2084_v1, %v827_v28  ;;  %v939_v21 = vmax.f32 %v833_v50, 0.0 }
 0x15f   :  { %v938_v11 = vmax.f32 %v828_v58, 0.0  ;;  %v986_v20 = vsel %vm2095_vm10, %v939_v21, 0.0 }
 0x160   :  { %v989_v41 = vsel %vm636_vm7, %v986_v20, -inf }
 0x161   :  { %v974_v60 = vsel %vm2114_vm12, %v938_v11, 0.0 }
 0x162   :  { %v977_v27 = vsel %vm636_vm7, %v974_v60, -inf }
 0x163   :  { %v979_v46 = vmax.f32 %v978_v48, %v977_v27 }
 0x16e   :  { %v1286_v4 = vpop.f32.mrf.mxu0 }
 0x16f   :  { %v843_v24 = vadd.f32 %v1286_v4, %v2084_v1 }
 0x170   :  { %v837_v30 = vpop.f32.mrf.mxu0 }
 0x171   :  { %v838_v45 = vadd.f32 %v2084_v1, %v837_v30  ;;  %v941_v2 = vmax.f32 %v843_v24, 0.0 }
 0x173   :  { %v940_v33 = vmax.f32 %v838_v45, 0.0  ;;  %v988_v7 = vsel %vm2114_vm12, %v941_v2, 0.0 }
 0x175   :  { %v987_v22 = vsel %vm2101_vm11, %v940_v33, 0.0 }
 0x176   :  { %v990_v26 = vsel %vm636_vm7, %v987_v22, -inf }
 0x177   :  { %v992_v37 = vmax.f32 %v989_v41, %v990_v26 }
 0x185   :  { %v1301_v10 = vpop.f32.mrf.mxu1 }
 0x186   :  { %v893_v49 = vadd.f32 %v1301_v10, %v2084_v1 }
 0x187   :  { %v2088_v47 = vpop.f32.mrf.mxu1 }
 0x18d   :  { %v1289_v32 = vpop.f32.mrf.mxu0 }
 0x18e   :  { %v853_v59 = vadd.f32 %v1289_v32, %v2084_v1 }
 0x18f   :  { %v847_v16 = vpop.f32.mrf.mxu0 }
 0x190   :  { %v848_v44 = vadd.f32 %v2084_v1, %v847_v16  ;;  %v943_v63 = vmax.f32 %v853_v59, 0.0  ;;  %v980_v59 = vrot.slane %v979_v46, 4 }
 0x192   :  { %v942_v3 = vmax.f32 %v848_v44, 0.0  ;;  %v1001_v30 = vsel %vm2101_vm11, %v943_v63, 0.0  ;;  %v981_v25 = vmax.f32 %v979_v46, %v980_v59 }
 0x194   :  { %v1000_v29 = vsel %vm2095_vm10, %v942_v3, 0.0  ;;  %v982_v46 = vrot.slane %v981_v25, 2 }
 0x195   :  { %v1003_v10 = vsel %vm636_vm7, %v1000_v29, -inf }
 0x1a5   :  { %v1304_v61 = vpop.f32.mrf.mxu1 }
 0x1a6   :  { %v903_v6 = vadd.f32 %v1304_v61, %v2084_v1  ;;  %v991_v61 = vsel %vm636_vm7, %v988_v7, -inf }
 0x1a7   :  { %v897_v51 = vpop.f32.mrf.mxu1  ;;  %v993_v21 = vmax.f32 %v992_v37, %v991_v61 }
 0x1a8   :  { %v898_v53 = vadd.f32 %v2084_v1, %v897_v51  ;;  %v953_v36 = vmax.f32 %v903_v6, 0.0 }
 0x1a9   :  { %v994_v17 = vrot.slane %v993_v21, 4 }
 0x1aa   :  { %v952_v57 = vmax.f32 %v898_v53, 0.0  ;;  %v1044_v20 = vsel %vm2114_vm12, %v953_v36, 0.0 }
 0x1ab   :  { %v1047_v48 = vsel %vm636_vm7, %v1044_v20, -inf }
 0x1ac   :  { %v1043_v15 = vsel %vm2101_vm11, %v952_v57, 0.0 }
 0x1ad   :  { %v1292_v31 = vpop.f32.mrf.mxu0  ;;  %v1046_v24 = vsel %vm636_vm7, %v1043_v15, -inf }
 0x1ae   :  { %v863_v8 = vadd.f32 %v1292_v31, %v2084_v1 }
 0x1af   :  { %v857_v40 = vpop.f32.mrf.mxu0 }
 0x1b0   :  { %v858_v54 = vadd.f32 %v2084_v1, %v857_v40  ;;  %v945_v55 = vmax.f32 %v863_v8, 0.0  ;;  %v951_v40 = vmax.f32 %v893_v49, 0.0 }
 0x1b2   :  { %v944_v12 = vmax.f32 %v858_v54, 0.0  ;;  %v1014_v28 = vsel %vm2095_vm10, %v945_v55, 0.0  ;;  %v1042_v44 = vsel %vm2095_vm10, %v951_v40, 0.0 }
 0x1b3   :  { %v1017_v39 = vsel %vm636_vm7, %v1014_v28, -inf  ;;  %v1045_v5 = vsel %vm636_vm7, %v1042_v44, -inf }
 0x1b4   :  { %v1002_v32 = vsel %vm2114_vm12, %v944_v12, 0.0  ;;  %v1048_v3 = vmax.f32 %v1045_v5, %v1046_v24  ;;  %v983_v24 = vmax.f32 %v981_v25, %v982_v46 }
 0x1b5   :  { %v1005_v9 = vsel %vm636_vm7, %v1002_v32, -inf }
 0x1b6   :  { %v1049_v41 = vmax.f32 %v1048_v3, %v1047_v48 }
 0x1b8   :  { %v1050_v40 = vrot.slane %v1049_v41, 4 }
 0x1c5   :  { %v1307_v34 = vpop.f32.mrf.mxu1 }
 0x1c6   :  { %v913_v50 = vadd.f32 %v1307_v34, %v2084_v1  ;;  %v888_v34 = vadd.f32 %v2084_v1, %v2088_v47 }
 0x1c7   :  { %v907_v52 = vpop.f32.mrf.mxu1 }
 0x1c8   :  { %v908_v16 = vadd.f32 %v2084_v1, %v907_v52  ;;  %v955_v51 = vmax.f32 %v913_v50, 0.0  ;;  %v950_v12 = vmax.f32 %v888_v34, 0.0 }
 0x1ca   :  { %v954_v62 = vmax.f32 %v908_v16, 0.0  ;;  %v1057_v22 = vsel %vm2101_vm11, %v955_v51, 0.0  ;;  %v1030_v32 = vsel %vm2114_vm12, %v950_v12, 0.0 }
 0x1cb   :  { %v1060_v26 = vsel %vm636_vm7, %v1057_v22, -inf }
 0x1cd   :  { %v1295_v43 = vpop.f32.mrf.mxu0 }
 0x1ce   :  { %v873_v23 = vadd.f32 %v1295_v43, %v2084_v1 }
 0x1cf   :  { %v867_v14 = vpop.f32.mrf.mxu0 }
 0x1d0   :  { %v868_v0 = vadd.f32 %v2084_v1, %v867_v14  ;;  %v947_v4 = vmax.f32 %v873_v23, 0.0  ;;  %v1004_v14 = vsel %vm636_vm7, %v1001_v30, -inf }
 0x1d1   :  { %v1006_v38 = vmax.f32 %v1003_v10, %v1004_v14  ;;  %v1033_v14 = vsel %vm636_vm7, %v1030_v32, -inf }
 0x1d2   :  { %v946_v13 = vmax.f32 %v868_v0, 0.0  ;;  %v1016_v35 = vsel %vm2114_vm12, %v947_v4, 0.0 }
 0x1d3   :  { %v1007_v33 = vmax.f32 %v1006_v38, %v1005_v9  ;;  %v1019_v8 = vsel %vm636_vm7, %v1016_v35, -inf }
 0x1d4   :  { %v1015_v18 = vsel %vm2101_vm11, %v946_v13, 0.0  ;;  %v1056_v13 = vsel %vm2095_vm10, %v954_v62, 0.0  ;;  %v1051_v62 = vmax.f32 %v1049_v41, %v1050_v40 }
 0x1d5   :  { %v1018_v31 = vsel %vm636_vm7, %v1015_v18, -inf  ;;  %v1008_v2 = vrot.slane %v1007_v33, 4  ;;  %v1059_v47 = vsel %vm636_vm7, %v1056_v13, -inf  ;;  %v995_v18 = vmax.f32 %v993_v21, %v994_v17 }
 0x1d6   :  { %v1020_v45 = vmax.f32 %v1017_v39, %v1018_v31  ;;  %v1062_v27 = vmax.f32 %v1059_v47, %v1060_v26  ;;  %v1052_v5 = vrot.slane %v1051_v62, 2 }
 0x1d7   :  { %v1009_v57 = vmax.f32 %v1007_v33, %v1008_v2  ;;  %v996_v37 = vrot.slane %v995_v18, 2 }
 0x1d8   :  { %v1021_v54 = vmax.f32 %v1020_v45, %v1019_v8  ;;  %v1053_v47 = vmax.f32 %v1051_v62, %v1052_v5 }
 0x1d9   :  { %v1010_v15 = vrot.slane %v1009_v57, 2  ;;  %v997_v38 = vmax.f32 %v995_v18, %v996_v37 }
 0x1da   :  { %v1022_v60 = vrot.slane %v1021_v54, 4  ;;  %v1054_v41 = vrot.slane %v1053_v47, 1 }
 0x1db   :  { %v1011_v44 = vmax.f32 %v1009_v57, %v1010_v15 }
 0x1dc   :  { %v1023_v4 = vmax.f32 %v1021_v54, %v1022_v60  ;;  %v998_v54 = vrot.slane %v997_v38, 1 }
 0x1dd   :  { %v1012_v17 = vrot.slane %v1011_v44, 1 }
 0x1de   :  { %v999_v25 = vmax.f32 %v997_v38, %v998_v54 }
 0x1df   :  { %v1013_v60 = vmax.f32 %v1011_v44, %v1012_v17 }
 0x1e5   :  { %v1310_v43 = vpop.f32.mrf.mxu1 }
 0x1e6   :  { %v923_v30 = vadd.f32 %v1310_v43, %v2084_v1  ;;  %v1024_v43 = vrot.slane %v1023_v4, 2 }
 0x1e7   :  { %v917_v58 = vpop.f32.mrf.mxu1 }
 0x1e8   :  { %v918_v0 = vadd.f32 %v2084_v1, %v917_v58  ;;  %v957_v9 = vmax.f32 %v923_v30, 0.0  ;;  %v1025_v33 = vmax.f32 %v1023_v4, %v1024_v43  ;;  %v1055_v4 = vmax.f32 %v1053_v47, %v1054_v41 }
 0x1ea   :  { %v956_v11 = vmax.f32 %v918_v0, 0.0  ;;  %v1070_v51 = vsel %vm2095_vm10, %v957_v9, 0.0  ;;  %v1026_v56 = vrot.slane %v1025_v33, 1 }
 0x1ec   :  { %v1058_v55 = vsel %vm2114_vm12, %v956_v11, 0.0  ;;  %v1027_v12 = vmax.f32 %v1025_v33, %v1026_v56 }
 0x1ed   :  { %v1298_v53 = vpop.f32.mrf.mxu0  ;;  %v1061_v29 = vsel %vm636_vm7, %v1058_v55, -inf }
 0x1ee   :  { %v883_v23 = vadd.f32 %v1298_v53, %v2084_v1  ;;  %v1063_v16 = vmax.f32 %v1062_v27, %v1061_v29  ;;  %v984_v53 = vrot.slane %v983_v24, 1 }
 0x1ef   :  { %v877_v63 = vpop.f32.mrf.mxu0 }
 0x1f0   :  { %v949_v49 = vmax.f32 %v883_v23, 0.0  ;;  %v878_v52 = vadd.f32 %v2084_v1, %v877_v63  ;;  %v1064_v45 = vrot.slane %v1063_v16, 4  ;;  %v985_v63 = vmax.f32 %v983_v24, %v984_v53 }
 0x1f2   :  { %v1029_v7 = vsel %vm2101_vm11, %v949_v49, 0.0  ;;  %v948_v28 = vmax.f32 %v878_v52, 0.0  ;;  %v1065_v11 = vmax.f32 %v1063_v16, %v1064_v45  ;;  %v1085_v18 = vsel %vm1084_vm13, %v985_v63, %v999_v25 }
 0x1f3   :  { %v1032_v10 = vsel %vm636_vm7, %v1029_v7, -inf  ;;  %v1087_v29 = vsel %vm1086_vm14, %v1085_v18, %v1013_v60 }
 0x1f4   :  { %v1028_v31 = vsel %vm2095_vm10, %v948_v28, 0.0  ;;  %v1066_v22 = vrot.slane %v1065_v11, 2  ;;  %v1089_v27 = vsel %vm1088_vm15, %v1087_v29, %v1027_v12 }
 0x1f5   :  { %v1031_v6 = vsel %vm636_vm7, %v1028_v31, -inf }
 0x1f6   :  { %v1034_v39 = vmax.f32 %v1031_v6, %v1032_v10  ;;  %v1313_v50 = vpop.f32.mrf.mxu1  ;;  %v1067_v49 = vmax.f32 %v1065_v11, %v1066_v22  ;;  %v1213_v6 = vld [vmem:[%s2217_s5] ss:$0 sm:$0xff] }
 0x1f7   :  { %v933_v35 = vadd.f32 %v1313_v50, %v2084_v1 }
 0x1f8   :  { %v1035_v58 = vmax.f32 %v1034_v39, %v1033_v14  ;;  %v927_v61 = vpop.f32.mrf.mxu1  ;;  %v1068_v7 = vrot.slane %v1067_v49, 1 }
 0x1f9   :  { %v959_v0 = vmax.f32 %v933_v35, 0.0  ;;  %v928_v21 = vadd.f32 %v2084_v1, %v927_v61  ;;  %v1073_v1 = vsel %vm636_vm7, %v1070_v51, -inf }
 0x1fa   :  { %v1036_v36 = vrot.slane %v1035_v58, 4  ;;  %v1069_v31 = vmax.f32 %v1067_v49, %v1068_v7 }
 0x1fb   :  { %v958_v8 = vmax.f32 %v928_v21, 0.0  ;;  %v1072_v34 = vsel %vm2114_vm12, %v959_v0, 0.0 }
 0x1fc   :  { %v1037_v59 = vmax.f32 %v1035_v58, %v1036_v36  ;;  %v1075_v23 = vsel %vm636_vm7, %v1072_v34, -inf }
 0x1fd   :  { %v1071_v13 = vsel %vm2101_vm11, %v958_v8, 0.0 }
 0x1fe   :  { %v1038_v20 = vrot.slane %v1037_v59, 2  ;;  %v1074_v3 = vsel %vm636_vm7, %v1071_v13, -inf }
 0x1ff   :  { %v1076_v2 = vmax.f32 %v1073_v1, %v1074_v3 }
 0x200   :  { %v1039_v55 = vmax.f32 %v1037_v59, %v1038_v20 }
 0x201   :  { %v1077_v19 = vmax.f32 %v1076_v2, %v1075_v23 }
 0x202   :  { %v1040_v42 = vrot.slane %v1039_v55, 1 }
 0x203   :  { %v1078_v48 = vrot.slane %v1077_v19, 4 }
 0x204   :  { %v1041_v52 = vmax.f32 %v1039_v55, %v1040_v42 }
 0x205   :  { %v1079_v26 = vmax.f32 %v1077_v19, %v1078_v48 }
 0x206   :  { %v1090_v28 = vsel %vm439_vm3, %v1089_v27, %v1041_v52 }
 0x207   :  { %v1080_v57 = vrot.slane %v1079_v26, 2  ;;  %v1091_v16 = vsel %vm317_vm2, %v1090_v28, %v1055_v4 }
 0x208   :  { %v1092_v40 = vsel %vm195_vm0, %v1091_v16, %v1069_v31 }
 0x209   :  { %v1081_v30 = vmax.f32 %v1079_v26, %v1080_v57 }
 0x20b   :  { %v1082_v32 = vrot.slane %v1081_v30, 1 }
 0x20d   :  { %v1083_v37 = vmax.f32 %v1081_v30, %v1082_v32 }
 0x20f   :  { %v1093_v10 = vsel %vm73_vm1, %v1092_v40, %v1083_v37 }
 0x210   :  { %1331 = vmatmul.mubr.msk.f32.vlgmr.msra.gmra.mxu1 %vm636_vm7, %v1093_v10 }
 0x2d0   :  { %v1178_v46 = vpop.f32.mrf.mxu1 }
 0x2d1   :  { %v1179_v15 = vadd.f32 %v1213_v6, %v1178_v46 }
 0x2d2   :  { %v1332_v39 = vpop.f32.mrf.mxu1 }
 0x2d3   :  { %1182 = vst.msk [vmem:[%s2218_s6] sm:$0xff] %vm561_vm4, %v1179_v15 }

// kernel: hit_conv1d_forward.3
= control target key start
LH: loop header
LB: loop body
LE: loop exit
PB: predicated region body
PF: predicated region fallthrough
CT: control target
= control target key end

     0   :  { %s1856_s0 = inlined_call_operand.vmem [shape: f32[8,32], index: 0, kind: input, shape index: {}]   ;;  %s1857_s1 = inlined_call_operand.vmem [shape: f32[32,96], index: 1, kind: input, shape index: {}]   ;;  %s1858_s2 = inlined_call_operand.vmem [shape: f32[1,96], index: 2, kind: input, shape index: {}]   ;;  %s1859_s3 = inlined_call_operand.vmem [shape: f32[32,32], index: 3, kind: input, shape index: {}]   ;;  %s1860_s4 = inlined_call_operand.vmem [shape: f32[1,32], index: 4, kind: input, shape index: {}]   ;;  %s1861_s5 = inlined_call_operand.vmem [shape: f32[1,32], index: 5, kind: input, shape index: {}]   ;;  %s1862_s6 = inlined_call_operand.vmem [shape: f32[1,32], index: 6, kind: input, shape index: {}]   ;;  %s1863_s7 = inlined_call_operand.vmem [shape: f32[32,64], index: 7, kind: input, shape index: {}]   ;;  %s1864_s8 = inlined_call_operand.vmem [shape: f32[1,64], index: 8, kind: input, shape index: {}]   ;;  %s1865_s9 = inlined_call_operand.vmem [shape: f32[64,32], index: 9, kind: input, shape index: {}]   ;;  %s1866_s10 = inlined_call_operand.vmem [shape: f32[1,32], index: 10, kind: input, shape index: {}]   ;;  %s1867_s11 = inlined_call_operand.vmem [shape: f32[1,32], index: 11, kind: input, shape index: {}]   ;;  %s1868_s12 = inlined_call_operand.vmem [shape: f32[1,32], index: 12, kind: input, shape index: {}]   ;;  %s1869_s13 = inlined_call_operand.vmem [shape: f32[32,4], index: 13, kind: input, shape index: {}]   ;;  %s1870_s14 = inlined_call_operand.vmem [shape: f32[1,4], index: 14, kind: input, shape index: {}]   ;;  %s1871_s15 = inlined_call_operand.hbm [shape: f32[8,32], index: 15, kind: output, shape index: {0}]   ;;  %s1872_s16 = inlined_call_operand.hbm [shape: f32[2,4], index: 16, kind: output, shape index: {1}]  }
   0x1   :  { %1873 = sst [smem:[#allocation8_spill]] %s1856_s0 }
   0x2   :  { %22 = vsyncpa [#allocation3], 0  ;;  %v58_v0 = vld [vmem:[%s1857_s1 + $0x18] sm:$0xff]  ;;  %v1529_v1 = vmov 0.0   ;;  %v57_v2 = vld [vmem:[%s1857_s1 + $0x10] sm:$0xff]  ;;  %vm1530_vm0 = vmmov 0  }
   0x3   :  { %1348 = vmatprep.subr.mxu0 %v1529_v1  ;;  %1356 = vmatprep.mubr.msk.f32.mxu0 %vm1530_vm0, %v1529_v1 }
   0x4   :  { %1349 = vmatpush3.msra.mxu0 %v58_v0  ;;  %1359 = vmatprep.subr.mxu1 %v1529_v1 }
   0x5   :  { %23 = vsyncpa [#allocation5], 0  ;;  %1350 = vmatprep.subr.mxu0 %v1529_v1  ;;  %v56_v3 = vld [vmem:[%s1857_s1 + $0x8] sm:$0xff]  ;;  %1361 = vmatprep.mubr.msk.f32.mxu1 %vm1530_vm0, %v1529_v1  ;;  %v55_v4 = vld [vmem:[%s1857_s1] sm:$0xff]  ;;  %s1874_s0 = sld [smem:[#allocation8_spill]]  ;;  %vm66_vm1 = vcmask 261120  }
   0x6   :  { %1351 = vmatpush3.msra.mxu0 %v57_v2  ;;  %v1273_v6 = vld [vmem:[%s1858_s2] ss:$0 sm:$0xff]  ;;  %s1531_s18 = smov 64   ;;  %s1532_s19 = smov 96   ;;  %vm144_vm2 = vcmask 130048   ;;  %vm238_vm3 = vcmask 1043456  }
   0x7   :  { %1352 = vmatprep.subr.mxu0 %v1529_v1  ;;  %s1533_s20 = smov 80   ;;  %s1534_s21 = smov 112   ;;  %vm220_vm4 = vcmask 27648   ;;  %vm234_vm5 = vcmask 31744   ;;  %vm1038_vm6 = vcmask 523264   ;;  %vm1146_vm7 = vcmask 1040384  }
   0x8   :  { %1353 = vmatpush3.msra.mxu0 %v56_v3  ;;  %s1535_s2 = smov 48   ;;  %s1536_s30 = smov 16   ;;  %vm1232_vm8 = vcmask 25600  }
   0x9   :  { %1354 = vmatprep.subr.mxu0 %v1529_v1 }
   0xa   :  { %1355 = vmatpush3.msra.mxu0 %v55_v4 }
   0xb   :  { %v1647_v5 = vld [vmem:[%s1874_s0] sm:$0xff]  ;;  %1379 = vmatprep.subr.mxu0 %v1529_v1 }
   0xc   :  { %1357 = vmatmul.mubr.msk.f32.vlgmr.msra.gmra.mxu0 %vm66_vm1, %v1647_v5 }
   0xd   :  { %1381 = vmatprep.mubr.msk.f32.mxu0 %vm1530_vm0, %v1529_v1 }
  0xcc   :  { %v136_v7 = vpop.f32.mrf.mxu0 }
  0xcd   :  { %v1658_v8 = vadd.f32 %v1273_v6, %v136_v7  ;;  %v826_v7 = vld [vmem:[%s1859_s3 + $0x18] sm:$0xff] }
  0xce   :  { %v1358_v9 = vpop.f32.mrf.mxu0 }
  0xcf   :  { %232 = vrot.lane.b32.xlu1 %v1658_v8, %s1531_s18  ;;  %142 = vrot.lane.b32.xlu0 %v1658_v8, %s1532_s19  ;;  %v140_v10 = vmul.f32 0.25, %v1658_v8  ;;  %v1677_v22 = vrot.slane %v1658_v8, 4  ;;  %v824_v9 = vld [vmem:[%s1859_s3 + $0x8] sm:$0xff] }
  0xd1   :  { %v482_v16 = vrot.slane %v140_v10, 4 }
  0xd3   :  { %313 = vrot.lane.b32.xlu1 %v1658_v8, %s1533_s20 }
  0xd7   :  { %311 = vrot.lane.b32.xlu1 %v140_v10, %s1534_s21 }
 0x141   :  { %v143_v11 = vpop.permute.xlu0 %142  ;;  %v233_v12 = vpop.permute.xlu1 %232 }
 0x142   :  { %1360 = vmatpush3.xpose.msk.msra.mxu1 %vm144_vm2, %v143_v11 }
 0x143   :  { %1364 = vmatprep.subr.mxu1 %v1529_v1 }
 0x145   :  { %1362 = vmatmul.mubr.msk.f32.vlgmr.msra.gmra.mxu1 %vm144_vm2, %v140_v10  ;;  %v314_v23 = vpop.permute.xlu1 %313  ;;  %v823_v10 = vld [vmem:[%s1859_s3] sm:$0xff] }
 0x146   :  { %1365 = vmatpush3.msk.msra.mxu1 %vm238_vm3, %v233_v12  ;;  %1366 = vmatprep.mubr.msk.f32.mxu1 %vm1530_vm0, %v1529_v1 }
 0x147   :  { %1369 = vmatprep.subr.mxu1 %v1529_v1 }
 0x149   :  { %v312_v24 = vpop.permute.xlu1 %311 }
 0x205   :  { %v216_v13 = vpop.f32.mrf.mxu1 }
 0x206   :  { %v221_v14 = vsel %vm220_vm4, %v216_v13, -inf }
 0x207   :  { %222 = vmax.xlane.f32.xlu0 %v221_v14  ;;  %v1363_v15 = vpop.f32.mrf.mxu1 }
 0x21d   :  { %648 = vrot.lane.b32.xlu0 %v482_v16, %s1534_s21 }
 0x290   :  { %v223_v17 = vpop.xlane.xlu0 %222 }
 0x291   :  { %v224_v18 = vsub.f32 %v216_v13, %v223_v17 }
 0x293   :  { %v225_v19 = vmul.f32 1.442695, %v224_v18 }
 0x294   :  { %v649_v28 = vpop.permute.xlu0 %648 }
 0x295   :  { %1461 = vpow2.f32 %v225_v19 }
 0x2a2   :  { %v1462_v20 = vpop.eup %1461 }
 0x2a3   :  { %v227_v21 = vsel %vm220_vm4, %v1462_v20, 0.0 }
 0x2a4   :  { %228 = vadd.xlane.f32.xlu1 %v227_v21 }
 0x2b5   :  { %484 = vrot.lane.b32.xlu1 %v1677_v22, %s1532_s19 }
 0x2b9   :  { %650 = vrot.lane.b32.xlu1 %v1677_v22, %s1533_s20 }
 0x32d   :  { %v229_v25 = vpop.xlane.xlu1 %228 }
 0x32e   :  { %1463 = vrcp.f32 %v229_v25 }
 0x331   :  { %v485_v26 = vpop.permute.xlu1 %484 }
 0x332   :  { %1380 = vmatpush3.xpose.msk.msra.mxu0 %vm144_vm2, %v485_v26 }
 0x333   :  { %1389 = vmatprep.subr.mxu0 %v1529_v1 }
 0x335   :  { %1382 = vmatmul.mubr.msk.f32.vlgmr.msra.gmra.mxu0 %vm144_vm2, %v482_v16  ;;  %v651_v27 = vpop.permute.xlu1 %650 }
 0x336   :  { %1390 = vmatpush3.xpose.msk.msra.mxu0 %vm144_vm2, %v651_v27  ;;  %1391 = vmatprep.mubr.msk.f32.mxu0 %vm1530_vm0, %v1529_v1 }
 0x337   :  { %1399 = vmatprep.subr.mxu0 %v1529_v1 }
 0x339   :  { %1392 = vmatmul.mubr.msk.f32.vlgmr.msra.gmra.mxu0 %vm144_vm2, %v649_v28 }
 0x33a   :  { %1407 = vmatprep.mubr.msk.f32.mxu0 %vm1530_vm0, %v1529_v1  ;;  %1400 = vmatpush3.msra.mxu0 %v826_v7 }
 0x33b   :  { %v1464_v29 = vpop.eup %1463  ;;  %1401 = vmatprep.subr.mxu0 %v1529_v1 }
 0x33c   :  { %v231_v30 = vmul.f32 %v1464_v29, %v1462_v20 }
 0x33e   :  { %1367 = vmatmul.mubr.msk.f32.vlgmr.msra.gmra.mxu1 %vm234_vm5, %v231_v30 }
 0x33f   :  { %1370 = vmatpush3.xpose.msk.msra.mxu1 %vm144_vm2, %v314_v23  ;;  %1371 = vmatprep.mubr.msk.f32.mxu1 %vm1530_vm0, %v1529_v1  ;;  %v1291_v23 = vld [vmem:[%s1860_s4] ss:$0 sm:$0xff] }
 0x340   :  { %1374 = vmatprep.subr.mxu1 %v1529_v1 }
 0x342   :  { %1372 = vmatmul.mubr.msk.f32.vlgmr.msra.gmra.mxu1 %vm144_vm2, %v312_v24 }
 0x343   :  { %1376 = vmatprep.mubr.msk.f32.mxu1 %vm1530_vm0, %v1529_v1 }
 0x3f5   :  { %v556_v31 = vpop.f32.mrf.mxu0 }
 0x3f6   :  { %v560_v32 = vsel %vm220_vm4, %v556_v31, -inf }
 0x3f7   :  { %561 = vmax.xlane.f32.xlu0 %v560_v32  ;;  %v1383_v33 = vpop.f32.mrf.mxu0 }
 0x3f9   :  { %v722_v34 = vpop.f32.mrf.mxu0 }
 0x3fa   :  { %v726_v41 = vsel %vm220_vm4, %v722_v34, -inf }
 0x3fb   :  { %v1393_v35 = vpop.f32.mrf.mxu0 }
 0x3fc   :  { %v940_v35 = vld [vmem:[%s1863_s7 + $0x10] sm:$0xff] }
 0x3fe   :  { %v1702_v36 = vpop.f32.mrf.mxu1 }
 0x400   :  { %v1368_v37 = vpop.f32.mrf.mxu1 }
 0x401   :  { %v1030_v37 = vld [vmem:[%s1865_s9 + $0x38] sm:$0xff] }
 0x402   :  { %v385_v38 = vpop.f32.mrf.mxu1 }
 0x403   :  { %v389_v39 = vsel %vm220_vm4, %v385_v38, -inf }
 0x404   :  { %390 = vmax.xlane.f32.xlu1 %v389_v39  ;;  %v1373_v40 = vpop.f32.mrf.mxu1  ;;  %v1028_v39 = vld [vmem:[%s1865_s9 + $0x28] sm:$0xff] }
 0x405   :  { %v1027_v40 = vld [vmem:[%s1865_s9 + $0x20] sm:$0xff] }
 0x408   :  { %727 = vmax.xlane.f32.xlu1 %v726_v41  ;;  %v1026_v41 = vld [vmem:[%s1865_s9 + $0x18] sm:$0xff] }
 0x40d   :  { %400 = vrot.lane.b32.xlu0 %v1658_v8, %s1535_s2  ;;  %v825_v8 = vld [vmem:[%s1859_s3 + $0x10] sm:$0xff] }
 0x40e   :  { %1402 = vmatpush3.msra.mxu0 %v825_v8  ;;  %v1151_v8 = vld [vmem:[%s1869_s13 + $0x18] sm:$0xff] }
 0x40f   :  { %1403 = vmatprep.subr.mxu0 %v1529_v1 }
 0x410   :  { %1404 = vmatpush3.msra.mxu0 %v824_v9  ;;  %v1150_v9 = vld [vmem:[%s1869_s13 + $0x10] sm:$0xff] }
 0x411   :  { %1405 = vmatprep.subr.mxu0 %v1529_v1 }
 0x412   :  { %1406 = vmatpush3.msra.mxu0 %v823_v10  ;;  %v1149_v10 = vld [vmem:[%s1869_s13 + $0x8] sm:$0xff] }
 0x413   :  { %1421 = vmatprep.subr.mxu0 %v1529_v1 }
 0x480   :  { %v562_v42 = vpop.xlane.xlu0 %561 }
 0x481   :  { %v563_v43 = vsub.f32 %v556_v31, %v562_v42 }
 0x483   :  { %v564_v44 = vmul.f32 1.442695, %v563_v43 }
 0x484   :  { %v401_v45 = vpop.permute.xlu0 %400 }
 0x485   :  { %1465 = vpow2.f32 %v564_v44  ;;  %1375 = vmatpush3.msk.msra.mxu1 %vm238_vm3, %v401_v45 }
 0x486   :  { %1384 = vmatprep.subr.mxu1 %v1529_v1 }
 0x48d   :  { %v391_v46 = vpop.xlane.xlu1 %390 }
 0x48e   :  { %v392_v54 = vsub.f32 %v385_v38, %v391_v46  ;;  %v1029_v38 = vld [vmem:[%s1865_s9 + $0x30] sm:$0xff]  ;;  %v1293_v46 = vld [vmem:[%s1861_s5] ss:$0 sm:$0xff] }
 0x490   :  { %v393_v55 = vmul.f32 1.442695, %v392_v54  ;;  %v1295_v54 = vld [vmem:[%s1864_s8] ss:$0 sm:$0xff] }
 0x491   :  { %v728_v47 = vpop.xlane.xlu1 %727 }
 0x492   :  { %v1466_v48 = vpop.eup %1465  ;;  %v729_v49 = vsub.f32 %v722_v34, %v728_v47  ;;  %v941_v34 = vld [vmem:[%s1863_s7 + $0x18] sm:$0xff] }
 0x493   :  { %v566_v50 = vsel %vm220_vm4, %v1466_v48, 0.0 }
 0x494   :  { %v730_v51 = vmul.f32 1.442695, %v729_v49  ;;  %567 = vadd.xlane.f32.xlu1 %v566_v50 }
 0x496   :  { %1467 = vpow2.f32 %v730_v51  ;;  %v1025_v51 = vld [vmem:[%s1865_s9 + $0x10] sm:$0xff] }
 0x497   :  { %1469 = vpow2.f32 %v393_v55 }
 0x4a3   :  { %v1468_v52 = vpop.eup %1467 }
 0x4a4   :  { %v732_v53 = vsel %vm220_vm4, %v1468_v52, 0.0  ;;  %v1470_v56 = vpop.eup %1469 }
 0x4a5   :  { %733 = vadd.xlane.f32.xlu1 %v732_v53  ;;  %v395_v57 = vsel %vm220_vm4, %v1470_v56, 0.0  ;;  %v1023_v53 = vld [vmem:[%s1865_s9] sm:$0xff] }
 0x4b6   :  { %571 = vrot.lane.b32.xlu1 %v1677_v22, %s1531_s18 }
 0x4da   :  { %396 = vadd.xlane.f32.xlu1 %v395_v57 }
 0x4eb   :  { %737 = vrot.lane.b32.xlu1 %v1677_v22, %s1535_s2 }
 0x51d   :  { %v568_v58 = vpop.xlane.xlu1 %567 }
 0x52e   :  { %v734_v59 = vpop.xlane.xlu1 %733 }
 0x532   :  { %v572_v60 = vpop.permute.xlu1 %571 }
 0x563   :  { %v397_v61 = vpop.xlane.xlu1 %396 }
 0x564   :  { %1471 = vrcp.f32 %v397_v61 }
 0x565   :  { %1473 = vrcp.f32 %v568_v58 }
 0x566   :  { %1475 = vrcp.f32 %v734_v59  ;;  %v1297_v59 = vld [vmem:[%s1866_s10] ss:$0 sm:$0xff] }
 0x567   :  { %v738_v4 = vpop.permute.xlu1 %737 }
 0x571   :  { %v1472_v62 = vpop.eup %1471 }
 0x572   :  { %v399_v63 = vmul.f32 %v1472_v62, %v1470_v56  ;;  %v1474_v0 = vpop.eup %1473 }
 0x573   :  { %v570_v2 = vmul.f32 %v1474_v0, %v1466_v48  ;;  %v1476_v3 = vpop.eup %1475  ;;  %v1294_v48 = vld [vmem:[%s1862_s6] ss:$0 sm:$0xff] }
 0x574   :  { %1377 = vmatmul.mubr.msk.f32.vlgmr.msra.gmra.mxu1 %vm234_vm5, %v399_v63  ;;  %v736_v6 = vmul.f32 %v1476_v3, %v1468_v52  ;;  %v1024_v52 = vld [vmem:[%s1865_s9 + $0x8] sm:$0xff] }
 0x575   :  { %1385 = vmatpush3.msk.msra.mxu1 %vm238_vm3, %v572_v60  ;;  %1386 = vmatprep.mubr.msk.f32.mxu1 %vm1530_vm0, %v1529_v1 }
 0x576   :  { %1394 = vmatprep.subr.mxu1 %v1529_v1 }
 0x578   :  { %1387 = vmatmul.mubr.msk.f32.vlgmr.msra.gmra.mxu1 %vm234_vm5, %v570_v2 }
 0x579   :  { %1395 = vmatpush3.msk.msra.mxu1 %vm238_vm3, %v738_v4  ;;  %1396 = vmatprep.mubr.msk.f32.mxu1 %vm1530_vm0, %v1529_v1 }
 0x57a   :  { %1410 = vmatprep.subr.mxu1 %v1529_v1 }
 0x57c   :  { %1397 = vmatmul.mubr.msk.f32.vlgmr.msra.gmra.mxu1 %vm234_vm5, %v736_v6 }
 0x57d   :  { %1418 = vmatprep.mubr.msk.f32.mxu1 %vm1530_vm0, %v1529_v1  ;;  %1411 = vmatpush3.msra.mxu1 %v941_v34 }
 0x57e   :  { %1412 = vmatprep.subr.mxu1 %v1529_v1 }
 0x57f   :  { %1413 = vmatpush3.msra.mxu1 %v940_v35 }
 0x580   :  { %1414 = vmatprep.subr.mxu1 %v1529_v1 }
 0x634   :  { %v473_v11 = vpop.f32.mrf.mxu1 }
 0x635   :  { %478 = vrot.lane.b32.xlu1 %v473_v11, %s1536_s30  ;;  %v1148_v11 = vld [vmem:[%s1869_s13] sm:$0xff] }
 0x636   :  { %v1378_v12 = vpop.f32.mrf.mxu1 }
 0x638   :  { %v644_v13 = vpop.f32.mrf.mxu1 }
 0x63a   :  { %v1388_v14 = vpop.f32.mrf.mxu1 }
 0x63c   :  { %v810_v15 = vpop.f32.mrf.mxu1 }
 0x63d   :  { %815 = vrot.lane.b32.xlu0 %v810_v15, %s1536_s30 }
 0x63e   :  { %v1398_v16 = vpop.f32.mrf.mxu1 }
 0x63f   :  { %v1299_v16 = vld [vmem:[%s1867_s11] ss:$0 sm:$0xff]  ;;  %s1537_s11 = smov [#allocation2]  }
 0x6a7   :  { %v479_v17 = vpop.permute.xlu1 %478 }
 0x6a8   :  { %v481_v21 = vsel %vm144_vm2, %v1702_v36, %v479_v17  ;;  %v938_v36 = vld [vmem:[%s1863_s7] sm:$0xff] }
 0x6af   :  { %v816_v18 = vpop.permute.xlu0 %815 }
 0x6b0   :  { %v818_v19 = vsel %vm144_vm2, %v644_v13, %v816_v18  ;;  %v1300_v18 = vld [vmem:[%s1868_s12] ss:$0 sm:$0xff]  ;;  %s1251_s12 = sshll.u32 %s1537_s11, 4  ;;  %s1252_s12 = int_to_ptr.vmem [resolvable:$true] %s1251_s12 }
 0x6b1   :  { %v820_v20 = vrot.slane %v818_v19, 4  ;;  %s1485_s17 = scalar_lea.vmem %s1252_s12, 128  ;;  %p1490_p1 = scmp.lt.s32.totalorder %s1252_s12, %s1252_s12 }
 0x6b2   :  { %p1486_p0 = scmp.ne.s32.totalorder %s1252_s12, %s1485_s17  ;;  %p1491_p2 = scmp.lt.s32.totalorder %s1485_s17, %s1485_s17 }
 0x6b3   :  { %v822_v22 = vsel %vm238_vm3, %v481_v21, %v820_v20 }
 0x6b4   :  { %1408 = vmatmul.mubr.msk.f32.vlgmr.msra.gmra.mxu0 %vm66_vm1, %v822_v22  ;;  %v1301_v22 = vld [vmem:[%s1870_s14] ss:$0 sm:$0xff]  ;;  %p1492_p3 = por %p1491_p2, %p1490_p1 }
 0x6b5   :  { %1437 = vmatprep.mubr.msk.f32.mxu0 %vm1530_vm0, %v1529_v1  ;;  %1422 = vmatpush3.msra.mxu0 %v1030_v37 }
 0x6b6   :  { %1423 = vmatprep.subr.mxu0 %v1529_v1  ;;  %p1493_p4 = pnand %p1492_p3, %p1486_p0 }
 0x6b7   :  { %1424 = vmatpush3.msra.mxu0 %v1029_v38 }
 0x6b8   :  { %1425 = vmatprep.subr.mxu0 %v1529_v1 }
 0x6b9   :  { %1426 = vmatpush3.msra.mxu0 %v1028_v39 }
 0x6ba   :  { %1427 = vmatprep.subr.mxu0 %v1529_v1 }
 0x6bb   :  { %1428 = vmatpush3.msra.mxu0 %v1027_v40 }
 0x6bc   :  { %1429 = vmatprep.subr.mxu0 %v1529_v1 }
 0x6bd   :  { %1430 = vmatpush3.msra.mxu0 %v1026_v41 }
 0x6be   :  { %1431 = vmatprep.subr.mxu0 %v1529_v1 }
 0x6bf   :  { %1432 = vmatpush3.msra.mxu0 %v1025_v51 }
 0x6c0   :  { %1433 = vmatprep.subr.mxu0 %v1529_v1 }
 0x6c1   :  { %1434 = vmatpush3.msra.mxu0 %v1024_v52 }
 0x6c2   :  { %1435 = vmatprep.subr.mxu0 %v1529_v1 }
 0x6c3   :  { %1436 = vmatpush3.msra.mxu0 %v1023_v53 }
 0x774   :  { %v903_v24 = vpop.f32.mrf.mxu0 }
 0x775   :  { %v904_v25 = vadd.f32 %v1291_v23, %v903_v24 }
 0x776   :  { %v1409_v26 = vpop.f32.mrf.mxu0 }
 0x777   :  { %v907_v27 = vadd.f32 %v904_v25, %v1647_v5  ;;  %v939_v5 = vld [vmem:[%s1863_s7 + $0x8] sm:$0xff] }
 0x778   :  { %1415 = vmatpush3.msra.mxu1 %v939_v5 }
 0x779   :  { %v910_v28 = vsel %vm66_vm1, %v907_v27, 0.0  ;;  %1416 = vmatprep.subr.mxu1 %v1529_v1 }
 0x77a   :  { %911 = vadd.xlane.f32.xlu0 %v910_v28  ;;  %1417 = vmatpush3.msra.mxu1 %v938_v36 }
 0x77b   :  { %1440 = vmatprep.subr.mxu1 %v1529_v1 }
 0x803   :  { %v912_v29 = vpop.xlane.xlu0 %911 }
 0x804   :  { %v914_v30 = vmul.f32 0.03125, %v912_v29 }
 0x806   :  { %v915_v31 = vsub.f32 %v907_v27, %v914_v30 }
 0x808   :  { %v916_v32 = vmul.f32 %v915_v31, %v915_v31 }
 0x80a   :  { %v917_v33 = vsel %vm66_vm1, %v916_v32, 0.0 }
 0x80b   :  { %918 = vadd.xlane.f32.xlu1 %v917_v33 }
 0x894   :  { %v919_v42 = vpop.xlane.xlu1 %918 }
 0x895   :  { %v920_v43 = vmul.f32 0.03125, %v919_v42 }
 0x897   :  { %v921_v44 = vadd.f32 1e-05, %v920_v43 }
 0x899   :  { %1477 = vrsqrt.f32 %v921_v44 }
 0x8a6   :  { %v1478_v45 = vpop.eup %1477 }
 0x8a7   :  { %v923_v47 = vmul.f32 %v1478_v45, %v915_v31 }
 0x8a9   :  { %v930_v49 = vmul.f32 %v1293_v46, %v923_v47 }
 0x8ab   :  { %v937_v50 = vadd.f32 %v1294_v48, %v930_v49 }
 0x8ad   :  { %1419 = vmatmul.mubr.msk.f32.vlgmr.msra.gmra.mxu1 %vm66_vm1, %v937_v50 }
 0x8ae   :  { %1448 = vmatprep.mubr.msk.f32.mxu1 %vm1530_vm0, %v1529_v1  ;;  %1441 = vmatpush3.msra.mxu1 %v1151_v8 }
 0x8af   :  { %1442 = vmatprep.subr.mxu1 %v1529_v1 }
 0x8b0   :  { %1443 = vmatpush3.msra.mxu1 %v1150_v9 }
 0x8b1   :  { %1444 = vmatprep.subr.mxu1 %v1529_v1 }
 0x8b2   :  { %1445 = vmatpush3.msra.mxu1 %v1149_v10 }
 0x8b3   :  { %1446 = vmatprep.subr.mxu1 %v1529_v1 }
 0x8b4   :  { %1447 = vmatpush3.msra.mxu1 %v1148_v11 }
 0x96d   :  { %v1018_v55 = vpop.f32.mrf.mxu1 }
 0x96e   :  { %v1019_v56 = vadd.f32 %v1295_v54, %v1018_v55 }
 0x96f   :  { %v1420_v57 = vpop.f32.mrf.mxu1 }
 0x970   :  { %v1022_v58 = vmax.f32 %v1019_v56, 0.0 }
 0x972   :  { %1438 = vmatmul.mubr.msk.f32.vlgmr.msra.gmra.mxu0 %vm1038_vm6, %v1022_v58 }
 0xa32   :  { %v1108_v60 = vpop.f32.mrf.mxu0 }
 0xa33   :  { %v1109_v61 = vadd.f32 %v1297_v59, %v1108_v60 }
 0xa34   :  { %v1439_v62 = vpop.f32.mrf.mxu0 }
 0xa35   :  { %v1112_v63 = vadd.f32 %v1109_v61, %v937_v50 }
 0xa37   :  { %v1115_v0 = vsel %vm66_vm1, %v1112_v63, 0.0 }
 0xa38   :  { %1116 = vadd.xlane.f32.xlu0 %v1115_v0 }
 0xac1   :  { %v1117_v2 = vpop.xlane.xlu0 %1116 }
 0xac2   :  { %v1118_v3 = vmul.f32 0.03125, %v1117_v2 }
 0xac4   :  { %v1119_v4 = vsub.f32 %v1112_v63, %v1118_v3 }
 0xac6   :  { %v1120_v6 = vmul.f32 %v1119_v4, %v1119_v4 }
 0xac8   :  { %v1121_v7 = vsel %vm66_vm1, %v1120_v6, 0.0 }
 0xac9   :  { %1122 = vadd.xlane.f32.xlu0 %v1121_v7 }
 0xb52   :  { %v1123_v12 = vpop.xlane.xlu0 %1122 }
 0xb53   :  { %v1124_v13 = vmul.f32 0.03125, %v1123_v12 }
 0xb55   :  { %v1125_v14 = vadd.f32 1e-05, %v1124_v13 }
 0xb57   :  { %1479 = vrsqrt.f32 %v1125_v14 }
 0xb64   :  { %v1480_v15 = vpop.eup %1479 }
 0xb65   :  { %v1127_v17 = vmul.f32 %v1480_v15, %v1119_v4 }
 0xb67   :  { %v1134_v19 = vmul.f32 %v1299_v16, %v1127_v17 }
 0xb69   :  { %v1141_v20 = vadd.f32 %v1300_v18, %v1134_v19 }
 0xb6b   :  { %v1144_v21 = vrot.slane %v1141_v20, 3  ;;  %1142 = vst.msk [vmem:[#allocation2] sm:$0xff] %vm66_vm1, %v1141_v20 }
 0xb6d   :  { %v1147_v1 = vsel %vm1146_vm7, %v1141_v20, %v1144_v21 }
 0xb6e   :  { %1449 = vmatmul.mubr.msk.f32.vlgmr.msra.gmra.mxu1 %vm66_vm1, %v1147_v1 }
 0xc2e   :  { %v1228_v23 = vpop.f32.mrf.mxu1 }
 0xc2f   :  { %v1229_v24 = vadd.f32 %v1301_v22, %v1228_v23 }
 0xc30   :  { %v1450_v25 = vpop.f32.mrf.mxu1 }
 0xc31   :  { %v1233_v26 = vsel %vm1232_vm8, %v1229_v24, -inf }
 0xc32   :  { %1234 = vmax.xlane.f32.xlu1 %v1233_v26 }
 0xcbb   :  { %v1235_v27 = vpop.xlane.xlu1 %1234 }
 0xcbc   :  { %v1236_v28 = vsub.f32 %v1229_v24, %v1235_v27 }
 0xcbe   :  { %v1237_v29 = vmul.f32 1.442695, %v1236_v28 }
 0xcc0   :  { %1481 = vpow2.f32 %v1237_v29 }
 0xccd   :  { %v1482_v30 = vpop.eup %1481 }
 0xcce   :  { %v1239_v31 = vsel %vm1232_vm8, %v1482_v30, 0.0 }
 0xccf   :  { %1240 = vadd.xlane.f32.xlu0 %v1239_v31 }
 0xcd0   :  { %1496 = shalt.err (!%p1493_p4)
}
 0xcd1   :  { %1254 = dma.vmem_to_hbm [thread:$0]  %s1252_s12, 128, %s1871_s15, [#allocation3]  }
 0xcd2   :  { %s1538_s4 = smov [#allocation4]  }
 0xcd3   :  { %s1261_s18 = sshll.u32 %s1538_s4, 4  ;;  %s1262_s18 = int_to_ptr.vmem [resolvable:$true] %s1261_s18 }
 0xcd4   :  { %s1505_s5 = scalar_lea.vmem %s1262_s18, 32  ;;  %p1510_p6 = scmp.lt.s32.totalorder %s1262_s18, %s1262_s18 }
 0xcd5   :  { %p1506_p5 = scmp.ne.s32.totalorder %s1262_s18, %s1505_s5  ;;  %p1511_p7 = scmp.lt.s32.totalorder %s1505_s5, %s1505_s5 }
 0xcd7   :  { %p1512_p8 = por %p1511_p7, %p1510_p6 }
 0xcd9   :  { %p1513_p9 = pnand %p1512_p8, %p1506_p5 }
 0xd58   :  { %v1241_v32 = vpop.xlane.xlu0 %1240 }
 0xd59   :  { %1483 = vrcp.f32 %v1241_v32 }
 0xd66   :  { %v1484_v33 = vpop.eup %1483 }
 0xd67   :  { %v1243_v34 = vmul.f32 %v1484_v33, %v1482_v30 }
 0xd69   :  { %1244 = vst.msk [vmem:[#allocation4] sm:$0x3] %vm1232_vm8, %v1243_v34 }
 0xd6a   :  { %1516 = shalt.err (!%p1513_p9)
}
 0xd6b   :  { %1264 = dma.vmem_to_hbm [thread:$0]  %s1262_s18, 32, %s1872_s16, [#allocation5]  }
 0xd6c   :  { %1525 = dma.done.wait [#allocation3], 128  }
 0xd6d   :  { %1526 = vsyncadd [#allocation3], 4294967168 }
 0xd6e   :  { %1527 = dma.done.wait [#allocation5], 32  }
 0xd6f   :  { %1528 = vsyncadd [#allocation5], 4294967264 }
 0xd70   :  { %1271 = vsyncpa [#allocation3], 1 }
 0xd71   :  { %1272 = vsyncpa [#allocation5], 1 }

</bundles_post_ra>
